<compile_context>
chip_gen: v5e
topology: v5e:2x2
jax: 0.10.0
libtpu: 0.0.40
codegen_flags: <defaults>
</compile_context>

<pallas_src>
import functools

import jax
import jax.numpy as jnp
from jax.experimental import pallas as pl
from jax.experimental.pallas import tpu as pltpu


# ----------------------------- model config ---------------------------------
NUM_CLASSES = 4
N_AUX_IN = 8          # n_aux_input_feature
N_AUX_OUT = 32        # n_aux_output_feature (fixed in module)
AUX_HID = 16
ENC_CH = 16           # stand-in encoder conv channels
ENC_OUT = 128         # encoder_output_size (stand-in; densenet121 would be 1000)
FUSION_OUT = 512      # fusion_output_size (fixed in module)
KH = KW = 3
C_IN = 3
OUT_PAD = 128         # lane-dense output slab width (logits live in [:NUM_CLASSES])
SUBLANES = 8


# ------------------------------ Pallas kernel -------------------------------
def _nn_hm_kernel(
    x_ref,            # [(ch+2)*W, KW*C_IN]  bf16  kw-gathered row chunk (with 2-row halo)
    convw_ref,        # [KH, KW*C_IN, ENC_CH] bf16 conv weights, rows ordered (kw, cin)
    convb_ref,        # [1, ENC_CH]  f32
    encw_ref,         # [ENC_CH, ENC_OUT] bf16
    encb_ref,         # [1, ENC_OUT] f32
    aux_ref,          # [B, N_AUX_IN] f32
    aw1_ref,          # [N_AUX_IN, AUX_HID] bf16
    ab1_ref,          # [1, AUX_HID] f32
    aw2_ref,          # [AUX_HID, N_AUX_OUT] bf16
    ab2_ref,          # [1, N_AUX_OUT] f32
    fw1e_ref,         # [ENC_OUT, FUSION_OUT] bf16  (fusion W1, encoder rows)
    fw1a_ref,         # [N_AUX_OUT, FUSION_OUT] bf16 (fusion W1, aux rows)
    fb1_ref,          # [1, FUSION_OUT] f32
    fw2_ref,          # [FUSION_OUT, FUSION_OUT] bf16
    fb2_ref,          # [1, FUSION_OUT] f32
    rw_ref,           # [FUSION_OUT, OUT_PAD] bf16 (zero-padded beyond NUM_CLASSES)
    rb_ref,           # [1, OUT_PAD] f32
    out_ref,          # [SUBLANES, OUT_PAD]  lane-dense logits slab for batch b
    pool_acc,         # VMEM scratch [1, ENC_CH] f32 — pooled-sum accumulator
    *, ch, w, inv_hw,
):
    f32 = jnp.float32
    bf16 = jnp.bfloat16
    b = pl.program_id(0)
    s = pl.program_id(1)
    n_s = pl.num_programs(1)

    # ---- init pooled-sum accumulator on the first spatial chunk of batch b ----
    @pl.when(s == 0)
    def _():
        pool_acc[...] = jnp.zeros_like(pool_acc)

    # ---- 3x3 conv on this row chunk: 3 sublane-shifted matmuls over (kw,cin)=9 ----
    xc = x_ref[...]                                  # [(ch+2)*w, 9] bf16
    rows = ch * w                                    # output rows in this chunk
    acc = jnp.zeros((rows, ENC_CH), f32)
    for kh in range(KH):
        win = xc[kh * w: kh * w + rows, :]           # [rows, 9] (aligned static slice)
        acc = acc + jnp.dot(win, convw_ref[kh], preferred_element_type=f32)
    conv = jnp.maximum(acc + convb_ref[...], 0.0)    # bias + ReLU in f32 (v5e-safe)

    # ---- global average pool: accumulate per-batch sum (XLU sublane reduce) ----
    pool_acc[...] += jnp.sum(conv, axis=0, keepdims=True)        # [1, ENC_CH]

    # ---- finalize: full MLP tail for batch b on the last spatial chunk ----
    @pl.when(s == n_s - 1)
    def _():
        # broadcast to 8 sublanes so every tail matmul is a clean (8, *) tile
        pooled = jnp.broadcast_to(pool_acc[...] * inv_hw, (SUBLANES, ENC_CH))
        enc_feat = (jnp.dot(pooled.astype(bf16), encw_ref[...],
                            preferred_element_type=f32) + encb_ref[...])

        # aux embedding: Linear -> ReLU -> Linear -> ReLU
        aux_row = jnp.broadcast_to(aux_ref[pl.ds(b, 1), :], (SUBLANES, N_AUX_IN))
        a1 = jnp.maximum(jnp.dot(aux_row.astype(bf16), aw1_ref[...],
                                 preferred_element_type=f32) + ab1_ref[...], 0.0)
        aux_feat = jnp.maximum(jnp.dot(a1.astype(bf16), aw2_ref[...],
                                       preferred_element_type=f32) + ab2_ref[...], 0.0)

        # fusion Linear(concat) realized as split-weight matmul sum
        f1 = (jnp.dot(enc_feat.astype(bf16), fw1e_ref[...], preferred_element_type=f32)
              + jnp.dot(aux_feat.astype(bf16), fw1a_ref[...], preferred_element_type=f32)
              + fb1_ref[...])
        f1 = jnp.maximum(f1, 0.0)                    # dropout = identity (eval)
        f2 = jnp.maximum(jnp.dot(f1.astype(bf16), fw2_ref[...],
                                 preferred_element_type=f32) + fb2_ref[...], 0.0)

        # regressor -> lane-dense (8, 128) slab, unmasked store
        logits = (jnp.dot(f2.astype(bf16), rw_ref[...], preferred_element_type=f32)
                  + rb_ref[...])
        out_ref[...] = logits.astype(out_ref.dtype)


# ------------------------------- wrapper -------------------------------------
def _replicated(shape):
    zeros = (0,) * len(shape)
    return pl.BlockSpec(shape, lambda b, s, _z=zeros: _z)


@functools.partial(jax.jit, static_argnames=("chunk_h",))
def nn_hm_forward(x_nchw, aux, params, *, chunk_h=8):
    B, cin, H, W = x_nchw.shape
    assert cin == C_IN
    assert H % chunk_h == 0, "chunk_h must divide H"
    nch = H // chunk_h
    chunk_rows = (chunk_h + 2) * W

    # NCHW -> NHWC, zero-pad spatially, kw-gather (3x channel inflation only).
    x = jnp.transpose(x_nchw, (0, 2, 3, 1))                        # [B, H, W, Cin]
    xp = jnp.pad(x, ((0, 0), (1, 1), (1, 1), (0, 0)))              # [B, H+2, W+2, Cin]
    xkw = jnp.concatenate([xp[:, :, kw:kw + W, :] for kw in range(KW)],
                          axis=-1)                                 # [B, H+2, W, 3*Cin]
    # overlapping row chunks (2-row halo), flattened per chunk, fed to MXU as bf16
    chunks = [xkw[:, i * chunk_h: i * chunk_h + chunk_h + 2] for i in range(nch)]
    x_chunks = (jnp.stack(chunks, axis=1)
                .reshape(B, nch, chunk_rows, KW * C_IN)
                .astype(jnp.bfloat16))

    rest = (
        params["conv_w"], params["conv_b"],
        params["enc_w"], params["enc_b"],
        aux,
        params["aux_w1"], params["aux_b1"],
        params["aux_w2"], params["aux_b2"],
        params["fus_w1_enc"], params["fus_w1_aux"], params["fus_b1"],
        params["fus_w2"], params["fus_b2"],
        params["reg_w"], params["reg_b"],
    )
    operands = (x_chunks,) + rest

    in_specs = [pl.BlockSpec((None, None, chunk_rows, KW * C_IN),
                             lambda b, s: (b, s, 0, 0))]
    in_specs += [_replicated(op.shape) for op in rest]
    out_specs = pl.BlockSpec((None, SUBLANES, OUT_PAD), lambda b, s: (b, 0, 0))

    # advisory cost estimate so XLA schedules/overlaps the call correctly
    flops = 2 * B * H * W * KH * KW * C_IN * ENC_CH
    flops += 2 * B * (ENC_CH * ENC_OUT + N_AUX_IN * AUX_HID + AUX_HID * N_AUX_OUT
                      + (ENC_OUT + N_AUX_OUT) * FUSION_OUT
                      + FUSION_OUT * FUSION_OUT + FUSION_OUT * OUT_PAD)
    bytes_accessed = int(sum(op.size * op.dtype.itemsize for op in operands)
                         + B * SUBLANES * OUT_PAD * 4)

    kernel = functools.partial(_nn_hm_kernel, ch=chunk_h, w=W,
                               inv_hw=1.0 / float(H * W))

    out_full = pl.pallas_call(
        kernel,
        out_shape=jax.ShapeDtypeStruct((B, SUBLANES, OUT_PAD), jnp.float32),
        grid_spec=pltpu.PrefetchScalarGridSpec(
            num_scalar_prefetch=0,
            grid=(B, nch),
            in_specs=in_specs,
            out_specs=out_specs,
            scratch_shapes=[pltpu.VMEM((1, ENC_CH), jnp.float32)],
        ),
        compiler_params=pltpu.CompilerParams(
            dimension_semantics=("parallel", "arbitrary"),
            vmem_limit_bytes=16 * 1024 * 1024,   # footprint is ~3 MiB; leave headroom
        ),
        cost_estimate=pl.CostEstimate(flops=flops, transcendentals=0,
                                      bytes_accessed=bytes_accessed),
    )(*operands)

    return out_full[:, 0, :NUM_CLASSES]


# --------------------------- deterministic params ----------------------------
def init_params(key):
    ks = jax.random.split(key, 8)
    bf16 = jnp.bfloat16

    def lin(k, n_in, n_out):
        scale = 1.0 / (n_in ** 0.5)
        w = jax.random.uniform(k, (n_in, n_out), jnp.float32, -scale, scale)
        return w.astype(bf16), jnp.zeros((1, n_out), jnp.float32)

    # conv weight generated torch-style [Cout, Cin, KH, KW], rearranged to
    # [KH, KW*Cin, Cout] (rows ordered (kw, cin)) for the kernel's 3-shift matmul.
    conv_w_t = jax.random.normal(ks[0], (ENC_CH, C_IN, KH, KW), jnp.float32) * 0.1
    conv_w = (jnp.transpose(conv_w_t, (2, 3, 1, 0))
              .reshape(KH, KW * C_IN, ENC_CH).astype(bf16))
    conv_b = jnp.zeros((1, ENC_CH), jnp.float32)

    enc_w, enc_b = lin(ks[1], ENC_CH, ENC_OUT)
    aux_w1, aux_b1 = lin(ks[2], N_AUX_IN, AUX_HID)
    aux_w2, aux_b2 = lin(ks[3], AUX_HID, N_AUX_OUT)

    # fusion layer 1 acts on concat([enc_feat, aux_feat]); split along input rows
    fus_w1, fus_b1 = lin(ks[4], ENC_OUT + N_AUX_OUT, FUSION_OUT)
    fus_w1_enc = fus_w1[:ENC_OUT, :]
    fus_w1_aux = fus_w1[ENC_OUT:, :]

    fus_w2, fus_b2 = lin(ks[5], FUSION_OUT, FUSION_OUT)

    # regressor, zero-padded to a lane-dense 128-wide output slab
    reg_w4, reg_b4 = lin(ks[6], FUSION_OUT, NUM_CLASSES)
    reg_w = jnp.zeros((FUSION_OUT, OUT_PAD), bf16).at[:, :NUM_CLASSES].set(reg_w4)
    reg_b = jnp.zeros((1, OUT_PAD), jnp.float32).at[:, :NUM_CLASSES].set(reg_b4)

    return dict(
        conv_w=conv_w, conv_b=conv_b,
        enc_w=enc_w, enc_b=enc_b,
        aux_w1=aux_w1, aux_b1=aux_b1,
        aux_w2=aux_w2, aux_b2=aux_b2,
        fus_w1_enc=fus_w1_enc, fus_w1_aux=fus_w1_aux, fus_b1=fus_b1,
        fus_w2=fus_w2, fus_b2=fus_b2,
        reg_w=reg_w, reg_b=reg_b,
    )


# ------------------------- pure-JAX reference check --------------------------
def reference_forward(x_nchw, aux, params):
    """Mirrors the kernel's bf16-input / f32-accumulate quantization exactly."""
    bf16, f32 = jnp.bfloat16, jnp.float32
    B, _, H, W = x_nchw.shape
    x = jnp.transpose(x_nchw, (0, 2, 3, 1))
    xp = jnp.pad(x, ((0, 0), (1, 1), (1, 1), (0, 0)))
    cols = [xp[:, kh:kh + H, kw:kw + W, :] for kh in range(KH) for kw in range(KW)]
    patches = jnp.concatenate(cols, axis=-1).reshape(B * H * W, KH * KW * C_IN)
    cw = params["conv_w"].reshape(KH * KW * C_IN, ENC_CH)
    conv = jnp.maximum(jnp.dot(patches.astype(bf16), cw, preferred_element_type=f32)
                       + params["conv_b"], 0.0)
    pooled = conv.reshape(B, H * W, ENC_CH).mean(axis=1)
    enc = (jnp.dot(pooled.astype(bf16), params["enc_w"], preferred_element_type=f32)
           + params["enc_b"])
    a1 = jnp.maximum(jnp.dot(aux.astype(bf16), params["aux_w1"],
                             preferred_element_type=f32) + params["aux_b1"], 0.0)
    a2 = jnp.maximum(jnp.dot(a1.astype(bf16), params["aux_w2"],
                             preferred_element_type=f32) + params["aux_b2"], 0.0)
    f1 = jnp.maximum(
        jnp.dot(enc.astype(bf16), params["fus_w1_enc"], preferred_element_type=f32)
        + jnp.dot(a2.astype(bf16), params["fus_w1_aux"], preferred_element_type=f32)
        + params["fus_b1"], 0.0)
    f2 = jnp.maximum(jnp.dot(f1.astype(bf16), params["fus_w2"],
                             preferred_element_type=f32) + params["fus_b2"], 0.0)
    logits = (jnp.dot(f2.astype(bf16), params["reg_w"], preferred_element_type=f32)
              + params["reg_b"])
    return logits[:, :NUM_CLASSES]


if __name__ == "__main__":
    key = jax.random.PRNGKey(0)
    kx, ka, kp = jax.random.split(key, 3)

    B, H, W = 2, 16, 16
    x = jax.random.normal(kx, (B, C_IN, H, W), jnp.float32)       # NCHW, like PyTorch
    aux = jax.random.normal(ka, (B, N_AUX_IN), jnp.float32)
    params = init_params(kp)

    out = nn_hm_forward(x, aux, params, chunk_h=8)
    out = jax.block_until_ready(out)

    ref = reference_forward(x, aux, params)
    assert out.shape == (B, NUM_CLASSES), out.shape
    assert jnp.allclose(out, ref, atol=1e-2, rtol=1e-2), (out, ref)

    print("KERNEL_OK")
</pallas_src>

<mosaic_0001>
module attributes {stable_mosaic.version = 11 : i64} {
  func.func @_nn_hm_kernel(%arg0: i32, %arg1: i32, %arg2: memref<1x1x160x9xbf16, #tpu.memory_space<vmem>>, %arg3: memref<3x9x16xbf16, #tpu.memory_space<vmem>>, %arg4: memref<1x16xf32, #tpu.memory_space<vmem>>, %arg5: memref<16x128xbf16, #tpu.memory_space<vmem>>, %arg6: memref<1x128xf32, #tpu.memory_space<vmem>>, %arg7: memref<2x8xf32, #tpu.memory_space<vmem>>, %arg8: memref<8x16xbf16, #tpu.memory_space<vmem>>, %arg9: memref<1x16xf32, #tpu.memory_space<vmem>>, %arg10: memref<16x32xbf16, #tpu.memory_space<vmem>>, %arg11: memref<1x32xf32, #tpu.memory_space<vmem>>, %arg12: memref<128x512xbf16, #tpu.memory_space<vmem>>, %arg13: memref<32x512xbf16, #tpu.memory_space<vmem>>, %arg14: memref<1x512xf32, #tpu.memory_space<vmem>>, %arg15: memref<512x512xbf16, #tpu.memory_space<vmem>>, %arg16: memref<1x512xf32, #tpu.memory_space<vmem>>, %arg17: memref<512x128xbf16, #tpu.memory_space<vmem>>, %arg18: memref<1x128xf32, #tpu.memory_space<vmem>>, %arg19: memref<1x8x128xf32, #tpu.memory_space<vmem>>, %arg20: memref<1x16xf32, #tpu.memory_space<vmem>>) attributes {dimension_semantics = [#tpu.dimension_semantics<parallel>, #tpu.dimension_semantics<arbitrary>], iteration_bounds = array<i64: 2, 2>, scalar_prefetch = 0 : i64, scratch_operands = 1 : i64, tpu.core_type = #tpu.core_type<tc>, window_params = [{transform_indices = @transform_0, window_bounds = array<i64: 1, 1, 160, 9>}, {pipeline_mode = #tpu.pipeline_mode<synchronous>, transform_indices = @transform_1, window_bounds = array<i64: 3, 9, 16>}, {pipeline_mode = #tpu.pipeline_mode<synchronous>, transform_indices = @transform_2, window_bounds = array<i64: 1, 16>}, {pipeline_mode = #tpu.pipeline_mode<synchronous>, transform_indices = @transform_3, window_bounds = array<i64: 16, 128>}, {pipeline_mode = #tpu.pipeline_mode<synchronous>, transform_indices = @transform_4, window_bounds = array<i64: 1, 128>}, {pipeline_mode = #tpu.pipeline_mode<synchronous>, transform_indices = @transform_5, window_bounds = array<i64: 2, 8>}, {pipeline_mode = #tpu.pipeline_mode<synchronous>, transform_indices = @transform_6, window_bounds = array<i64: 8, 16>}, {pipeline_mode = #tpu.pipeline_mode<synchronous>, transform_indices = @transform_7, window_bounds = array<i64: 1, 16>}, {pipeline_mode = #tpu.pipeline_mode<synchronous>, transform_indices = @transform_8, window_bounds = array<i64: 16, 32>}, {pipeline_mode = #tpu.pipeline_mode<synchronous>, transform_indices = @transform_9, window_bounds = array<i64: 1, 32>}, {pipeline_mode = #tpu.pipeline_mode<synchronous>, transform_indices = @transform_10, window_bounds = array<i64: 128, 512>}, {pipeline_mode = #tpu.pipeline_mode<synchronous>, transform_indices = @transform_11, window_bounds = array<i64: 32, 512>}, {pipeline_mode = #tpu.pipeline_mode<synchronous>, transform_indices = @transform_12, window_bounds = array<i64: 1, 512>}, {pipeline_mode = #tpu.pipeline_mode<synchronous>, transform_indices = @transform_13, window_bounds = array<i64: 512, 512>}, {pipeline_mode = #tpu.pipeline_mode<synchronous>, transform_indices = @transform_14, window_bounds = array<i64: 1, 512>}, {pipeline_mode = #tpu.pipeline_mode<synchronous>, transform_indices = @transform_15, window_bounds = array<i64: 512, 128>}, {pipeline_mode = #tpu.pipeline_mode<synchronous>, transform_indices = @transform_16, window_bounds = array<i64: 1, 128>}, {transform_indices = @transform_17, window_bounds = array<i64: 1, 8, 128>}]} {
    %c0_i32 = arith.constant 0 : i32
    %0 = arith.cmpi eq, %arg1, %c0_i32 : i32
    %1 = arith.extui %0 : i1 to i32
    %c0_i32_0 = arith.constant 0 : i32
    %2 = arith.cmpi ne, %1, %c0_i32_0 : i32
    scf.if %2 {
      %cst_23 = arith.constant 0.000000e+00 : f32
      %34 = vector.broadcast %cst_23 : f32 to vector<1x16xf32>
      %c0_24 = arith.constant 0 : index
      %c0_25 = arith.constant 0 : index
      %35 = vector.load %arg20[%c0_24, %c0_25] : memref<1x16xf32, #tpu.memory_space<vmem>>, vector<1x16xf32>
      tpu.vector_store %arg20[%c0_24, %c0_25], %34 {strides = array<i32>} : memref<1x16xf32, #tpu.memory_space<vmem>>, vector<1x16xf32>,
    } else {
    }
    %c0 = arith.constant 0 : index
    %c0_1 = arith.constant 0 : index
    %c0_2 = arith.constant 0 : index
    %c0_3 = arith.constant 0 : index
    %3 = vector.load %arg2[%c0, %c0_1, %c0_2, %c0_3] : memref<1x1x160x9xbf16, #tpu.memory_space<vmem>>, vector<1x1x160x9xbf16>
    %4 = vector.shape_cast %3 : vector<1x1x160x9xbf16> to vector<160x9xbf16>
    %cst = arith.constant 0.000000e+00 : f32
    %5 = vector.broadcast %cst : f32 to vector<128x16xf32>
    %6 = vector.extract_strided_slice %4 {offsets = [0, 0], sizes = [128, 9], strides = [1, 1]} : vector<160x9xbf16> to vector<128x9xbf16>
    %c0_4 = arith.constant 0 : index
    %c0_5 = arith.constant 0 : index
    %c0_6 = arith.constant 0 : index
    %7 = vector.load %arg3[%c0_4, %c0_5, %c0_6] : memref<3x9x16xbf16, #tpu.memory_space<vmem>>, vector<1x9x16xbf16>
    %8 = vector.shape_cast %7 : vector<1x9x16xbf16> to vector<9x16xbf16>
    %cst_7 = arith.constant dense<0.000000e+00> : vector<128x16xf32>
    %9 = tpu.matmul %6, %8, %cst_7 {dimension_numbers = #tpu.dot_dimension_numbers<[1], [0], [0], [1], [0, 0, 1, 1], [], []>} : vector<128x9xbf16>, vector<9x16xbf16>, vector<128x16xf32> -> vector<128x16xf32>
    %10 = arith.addf %5, %9 : vector<128x16xf32>
    %11 = vector.extract_strided_slice %4 {offsets = [16, 0], sizes = [128, 9], strides = [1, 1]} : vector<160x9xbf16> to vector<128x9xbf16>
    %c1 = arith.constant 1 : index
    %c0_8 = arith.constant 0 : index
    %c0_9 = arith.constant 0 : index
    %12 = vector.load %arg3[%c1, %c0_8, %c0_9] : memref<3x9x16xbf16, #tpu.memory_space<vmem>>, vector<1x9x16xbf16>
    %13 = vector.shape_cast %12 : vector<1x9x16xbf16> to vector<9x16xbf16>
    %cst_10 = arith.constant dense<0.000000e+00> : vector<128x16xf32>
    %14 = tpu.matmul %11, %13, %cst_10 {dimension_numbers = #tpu.dot_dimension_numbers<[1], [0], [0], [1], [0, 0, 1, 1], [], []>} : vector<128x9xbf16>, vector<9x16xbf16>, vector<128x16xf32> -> vector<128x16xf32>
    %15 = arith.addf %10, %14 : vector<128x16xf32>
    %16 = vector.extract_strided_slice %4 {offsets = [32, 0], sizes = [128, 9], strides = [1, 1]} : vector<160x9xbf16> to vector<128x9xbf16>
    %c2 = arith.constant 2 : index
    %c0_11 = arith.constant 0 : index
    %c0_12 = arith.constant 0 : index
    %17 = vector.load %arg3[%c2, %c0_11, %c0_12] : memref<3x9x16xbf16, #tpu.memory_space<vmem>>, vector<1x9x16xbf16>
    %18 = vector.shape_cast %17 : vector<1x9x16xbf16> to vector<9x16xbf16>
    %cst_13 = arith.constant dense<0.000000e+00> : vector<128x16xf32>
    %19 = tpu.matmul %16, %18, %cst_13 {dimension_numbers = #tpu.dot_dimension_numbers<[1], [0], [0], [1], [0, 0, 1, 1], [], []>} : vector<128x9xbf16>, vector<9x16xbf16>, vector<128x16xf32> -> vector<128x16xf32>
    %20 = arith.addf %15, %19 : vector<128x16xf32>
    %c0_14 = arith.constant 0 : index
    %c0_15 = arith.constant 0 : index
    %21 = vector.load %arg4[%c0_14, %c0_15] : memref<1x16xf32, #tpu.memory_space<vmem>>, vector<1x16xf32>
    %22 = vector.broadcast %21 : vector<1x16xf32> to vector<128x16xf32>
    %23 = arith.addf %20, %22 : vector<128x16xf32>
    %cst_16 = arith.constant 0.000000e+00 : f32
    %24 = vector.broadcast %cst_16 : f32 to vector<128x16xf32>
    %25 = arith.maximumf %23, %24 : vector<128x16xf32>
    %c0_17 = arith.constant 0 : index
    %c0_18 = arith.constant 0 : index
    %26 = vector.load %arg20[%c0_17, %c0_18] : memref<1x16xf32, #tpu.memory_space<vmem>>, vector<1x16xf32>
    %cst_19 = arith.constant dense<0.000000e+00> : vector<16xf32>
    %27 = vector.multi_reduction <add>, %25, %cst_19 [0] : vector<128x16xf32> to vector<16xf32>
    %28 = vector.shape_cast %27 : vector<16xf32> to vector<1x16xf32>
    %29 = arith.addf %26, %28 : vector<1x16xf32>
    %c0_20 = arith.constant 0 : index
    %c0_21 = arith.constant 0 : index
    %30 = vector.load %arg20[%c0_20, %c0_21] : memref<1x16xf32, #tpu.memory_space<vmem>>, vector<1x16xf32>
    tpu.vector_store %arg20[%c0_20, %c0_21], %29 {strides = array<i32>} : memref<1x16xf32, #tpu.memory_space<vmem>>, vector<1x16xf32>,
    %c1_i32 = arith.constant 1 : i32
    %31 = arith.cmpi eq, %arg1, %c1_i32 : i32
    %32 = arith.extui %31 : i1 to i32
    %c0_i32_22 = arith.constant 0 : i32
    %33 = arith.cmpi ne, %32, %c0_i32_22 : i32
    scf.if %33 {
      %c0_23 = arith.constant 0 : index
      %c0_24 = arith.constant 0 : index
      %34 = vector.load %arg20[%c0_23, %c0_24] : memref<1x16xf32, #tpu.memory_space<vmem>>, vector<1x16xf32>
      %cst_25 = arith.constant 3.906250e-03 : f32
      %35 = vector.broadcast %cst_25 : f32 to vector<1x16xf32>
      %36 = arith.mulf %34, %35 : vector<1x16xf32>
      %37 = vector.shape_cast %36 : vector<1x16xf32> to vector<1x16xf32>
      %38 = vector.broadcast %37 : vector<1x16xf32> to vector<8x16xf32>
      %39 = arith.truncf %38 : vector<8x16xf32> to vector<8x16xbf16>
      %c0_26 = arith.constant 0 : index
      %c0_27 = arith.constant 0 : index
      %40 = vector.load %arg5[%c0_26, %c0_27] : memref<16x128xbf16, #tpu.memory_space<vmem>>, vector<16x128xbf16>
      %cst_28 = arith.constant dense<0.000000e+00> : vector<8x128xf32>
      %41 = tpu.matmul %39, %40, %cst_28 {dimension_numbers = #tpu.dot_dimension_numbers<[1], [0], [0], [1], [0, 0, 1, 1], [], []>} : vector<8x16xbf16>, vector<16x128xbf16>, vector<8x128xf32> -> vector<8x128xf32>
      %c0_29 = arith.constant 0 : index
      %c0_30 = arith.constant 0 : index
      %42 = vector.load %arg6[%c0_29, %c0_30] : memref<1x128xf32, #tpu.memory_space<vmem>>, vector<1x128xf32>
      %43 = vector.broadcast %42 : vector<1x128xf32> to vector<8x128xf32>
      %44 = arith.addf %41, %43 : vector<8x128xf32>
      %45 = arith.index_cast %arg0 : i32 to index
      %c0_31 = arith.constant 0 : index
      %46 = vector.load %arg7[%45, %c0_31] : memref<2x8xf32, #tpu.memory_space<vmem>>, vector<1x8xf32>
      %47 = vector.shape_cast %46 : vector<1x8xf32> to vector<1x8xf32>
      %48 = vector.broadcast %47 : vector<1x8xf32> to vector<8x8xf32>
      %49 = arith.truncf %48 : vector<8x8xf32> to vector<8x8xbf16>
      %c0_32 = arith.constant 0 : index
      %c0_33 = arith.constant 0 : index
      %50 = vector.load %arg8[%c0_32, %c0_33] : memref<8x16xbf16, #tpu.memory_space<vmem>>, vector<8x16xbf16>
      %cst_34 = arith.constant dense<0.000000e+00> : vector<8x16xf32>
      %51 = tpu.matmul %49, %50, %cst_34 {dimension_numbers = #tpu.dot_dimension_numbers<[1], [0], [0], [1], [0, 0, 1, 1], [], []>} : vector<8x8xbf16>, vector<8x16xbf16>, vector<8x16xf32> -> vector<8x16xf32>
      %c0_35 = arith.constant 0 : index
      %c0_36 = arith.constant 0 : index
      %52 = vector.load %arg9[%c0_35, %c0_36] : memref<1x16xf32, #tpu.memory_space<vmem>>, vector<1x16xf32>
      %53 = vector.broadcast %52 : vector<1x16xf32> to vector<8x16xf32>
      %54 = arith.addf %51, %53 : vector<8x16xf32>
      %cst_37 = arith.constant 0.000000e+00 : f32
      %55 = vector.broadcast %cst_37 : f32 to vector<8x16xf32>
      %56 = arith.maximumf %54, %55 : vector<8x16xf32>
      %57 = arith.truncf %56 : vector<8x16xf32> to vector<8x16xbf16>
      %c0_38 = arith.constant 0 : index
      %c0_39 = arith.constant 0 : index
      %58 = vector.load %arg10[%c0_38, %c0_39] : memref<16x32xbf16, #tpu.memory_space<vmem>>, vector<16x32xbf16>
      %cst_40 = arith.constant dense<0.000000e+00> : vector<8x32xf32>
      %59 = tpu.matmul %57, %58, %cst_40 {dimension_numbers = #tpu.dot_dimension_numbers<[1], [0], [0], [1], [0, 0, 1, 1], [], []>} : vector<8x16xbf16>, vector<16x32xbf16>, vector<8x32xf32> -> vector<8x32xf32>
      %c0_41 = arith.constant 0 : index
      %c0_42 = arith.constant 0 : index
      %60 = vector.load %arg11[%c0_41, %c0_42] : memref<1x32xf32, #tpu.memory_space<vmem>>, vector<1x32xf32>
      %61 = vector.broadcast %60 : vector<1x32xf32> to vector<8x32xf32>
      %62 = arith.addf %59, %61 : vector<8x32xf32>
      %cst_43 = arith.constant 0.000000e+00 : f32
      %63 = vector.broadcast %cst_43 : f32 to vector<8x32xf32>
      %64 = arith.maximumf %62, %63 : vector<8x32xf32>
      %65 = arith.truncf %44 : vector<8x128xf32> to vector<8x128xbf16>
      %c0_44 = arith.constant 0 : index
      %c0_45 = arith.constant 0 : index
      %66 = vector.load %arg12[%c0_44, %c0_45] : memref<128x512xbf16, #tpu.memory_space<vmem>>, vector<128x512xbf16>
      %cst_46 = arith.constant dense<0.000000e+00> : vector<8x512xf32>
      %67 = tpu.matmul %65, %66, %cst_46 {dimension_numbers = #tpu.dot_dimension_numbers<[1], [0], [0], [1], [0, 0, 1, 1], [], []>} : vector<8x128xbf16>, vector<128x512xbf16>, vector<8x512xf32> -> vector<8x512xf32>
      %68 = arith.truncf %64 : vector<8x32xf32> to vector<8x32xbf16>
      %c0_47 = arith.constant 0 : index
      %c0_48 = arith.constant 0 : index
      %69 = vector.load %arg13[%c0_47, %c0_48] : memref<32x512xbf16, #tpu.memory_space<vmem>>, vector<32x512xbf16>
      %cst_49 = arith.constant dense<0.000000e+00> : vector<8x512xf32>
      %70 = tpu.matmul %68, %69, %cst_49 {dimension_numbers = #tpu.dot_dimension_numbers<[1], [0], [0], [1], [0, 0, 1, 1], [], []>} : vector<8x32xbf16>, vector<32x512xbf16>, vector<8x512xf32> -> vector<8x512xf32>
      %71 = arith.addf %67, %70 : vector<8x512xf32>
      %c0_50 = arith.constant 0 : index
      %c0_51 = arith.constant 0 : index
      %72 = vector.load %arg14[%c0_50, %c0_51] : memref<1x512xf32, #tpu.memory_space<vmem>>, vector<1x512xf32>
      %73 = vector.broadcast %72 : vector<1x512xf32> to vector<8x512xf32>
      %74 = arith.addf %71, %73 : vector<8x512xf32>
      %cst_52 = arith.constant 0.000000e+00 : f32
      %75 = vector.broadcast %cst_52 : f32 to vector<8x512xf32>
      %76 = arith.maximumf %74, %75 : vector<8x512xf32>
      %77 = arith.truncf %76 : vector<8x512xf32> to vector<8x512xbf16>
      %c0_53 = arith.constant 0 : index
      %c0_54 = arith.constant 0 : index
      %78 = vector.load %arg15[%c0_53, %c0_54] : memref<512x512xbf16, #tpu.memory_space<vmem>>, vector<512x512xbf16>
      %cst_55 = arith.constant dense<0.000000e+00> : vector<8x512xf32>
      %79 = tpu.matmul %77, %78, %cst_55 {dimension_numbers = #tpu.dot_dimension_numbers<[1], [0], [0], [1], [0, 0, 1, 1], [], []>} : vector<8x512xbf16>, vector<512x512xbf16>, vector<8x512xf32> -> vector<8x512xf32>
      %c0_56 = arith.constant 0 : index
      %c0_57 = arith.constant 0 : index
      %80 = vector.load %arg16[%c0_56, %c0_57] : memref<1x512xf32, #tpu.memory_space<vmem>>, vector<1x512xf32>
      %81 = vector.broadcast %80 : vector<1x512xf32> to vector<8x512xf32>
      %82 = arith.addf %79, %81 : vector<8x512xf32>
      %cst_58 = arith.constant 0.000000e+00 : f32
      %83 = vector.broadcast %cst_58 : f32 to vector<8x512xf32>
      %84 = arith.maximumf %82, %83 : vector<8x512xf32>
      %85 = arith.truncf %84 : vector<8x512xf32> to vector<8x512xbf16>
      %c0_59 = arith.constant 0 : index
      %c0_60 = arith.constant 0 : index
      %86 = vector.load %arg17[%c0_59, %c0_60] : memref<512x128xbf16, #tpu.memory_space<vmem>>, vector<512x128xbf16>
      %cst_61 = arith.constant dense<0.000000e+00> : vector<8x128xf32>
      %87 = tpu.matmul %85, %86, %cst_61 {dimension_numbers = #tpu.dot_dimension_numbers<[1], [0], [0], [1], [0, 0, 1, 1], [], []>} : vector<8x512xbf16>, vector<512x128xbf16>, vector<8x128xf32> -> vector<8x128xf32>
      %c0_62 = arith.constant 0 : index
      %c0_63 = arith.constant 0 : index
      %88 = vector.load %arg18[%c0_62, %c0_63] : memref<1x128xf32, #tpu.memory_space<vmem>>, vector<1x128xf32>
      %89 = vector.broadcast %88 : vector<1x128xf32> to vector<8x128xf32>
      %90 = arith.addf %87, %89 : vector<8x128xf32>
      %c0_64 = arith.constant 0 : index
      %c0_65 = arith.constant 0 : index
      %c0_66 = arith.constant 0 : index
      %91 = vector.load %arg19[%c0_64, %c0_65, %c0_66] : memref<1x8x128xf32, #tpu.memory_space<vmem>>, vector<1x8x128xf32>
      %92 = vector.shape_cast %91 : vector<1x8x128xf32> to vector<8x128xf32>
      %93 = vector.shape_cast %90 : vector<8x128xf32> to vector<1x8x128xf32>
      tpu.vector_store %arg19[%c0_64, %c0_65, %c0_66], %93 {strides = array<i32>} : memref<1x8x128xf32, #tpu.memory_space<vmem>>, vector<1x8x128xf32>,
    } else {
    }
    return
  }
  func.func @transform_0(%arg0: i32, %arg1: i32) -> (i32, i32, i32, i32) {
    %c0_i32 = arith.constant 0 : i32
    %c0_i32_0 = arith.constant 0 : i32
    %c0_i32_1 = arith.constant 0 : i32
    return %arg0, %arg1, %c0_i32, %c0_i32_0 : i32, i32, i32, i32
  }
  func.func @transform_1(%arg0: i32, %arg1: i32) -> (i32, i32, i32) {
    %c0_i32 = arith.constant 0 : i32
    %c0_i32_0 = arith.constant 0 : i32
    %c0_i32_1 = arith.constant 0 : i32
    %c0_i32_2 = arith.constant 0 : i32
    return %c0_i32, %c0_i32_0, %c0_i32_1 : i32, i32, i32
  }
  func.func @transform_2(%arg0: i32, %arg1: i32) -> (i32, i32) {
    %c0_i32 = arith.constant 0 : i32
    %c0_i32_0 = arith.constant 0 : i32
    %c0_i32_1 = arith.constant 0 : i32
    return %c0_i32, %c0_i32_0 : i32, i32
  }
  func.func @transform_3(%arg0: i32, %arg1: i32) -> (i32, i32) {
    %c0_i32 = arith.constant 0 : i32
    %c0_i32_0 = arith.constant 0 : i32
    %c0_i32_1 = arith.constant 0 : i32
    return %c0_i32, %c0_i32_0 : i32, i32
  }
  func.func @transform_4(%arg0: i32, %arg1: i32) -> (i32, i32) {
    %c0_i32 = arith.constant 0 : i32
    %c0_i32_0 = arith.constant 0 : i32
    %c0_i32_1 = arith.constant 0 : i32
    return %c0_i32, %c0_i32_0 : i32, i32
  }
  func.func @transform_5(%arg0: i32, %arg1: i32) -> (i32, i32) {
    %c0_i32 = arith.constant 0 : i32
    %c0_i32_0 = arith.constant 0 : i32
    %c0_i32_1 = arith.constant 0 : i32
    return %c0_i32, %c0_i32_0 : i32, i32
  }
  func.func @transform_6(%arg0: i32, %arg1: i32) -> (i32, i32) {
    %c0_i32 = arith.constant 0 : i32
    %c0_i32_0 = arith.constant 0 : i32
    %c0_i32_1 = arith.constant 0 : i32
    return %c0_i32, %c0_i32_0 : i32, i32
  }
  func.func @transform_7(%arg0: i32, %arg1: i32) -> (i32, i32) {
    %c0_i32 = arith.constant 0 : i32
    %c0_i32_0 = arith.constant 0 : i32
    %c0_i32_1 = arith.constant 0 : i32
    return %c0_i32, %c0_i32_0 : i32, i32
  }
  func.func @transform_8(%arg0: i32, %arg1: i32) -> (i32, i32) {
    %c0_i32 = arith.constant 0 : i32
    %c0_i32_0 = arith.constant 0 : i32
    %c0_i32_1 = arith.constant 0 : i32
    return %c0_i32, %c0_i32_0 : i32, i32
  }
  func.func @transform_9(%arg0: i32, %arg1: i32) -> (i32, i32) {
    %c0_i32 = arith.constant 0 : i32
    %c0_i32_0 = arith.constant 0 : i32
    %c0_i32_1 = arith.constant 0 : i32
    return %c0_i32, %c0_i32_0 : i32, i32
  }
  func.func @transform_10(%arg0: i32, %arg1: i32) -> (i32, i32) {
    %c0_i32 = arith.constant 0 : i32
    %c0_i32_0 = arith.constant 0 : i32
    %c0_i32_1 = arith.constant 0 : i32
    return %c0_i32, %c0_i32_0 : i32, i32
  }
  func.func @transform_11(%arg0: i32, %arg1: i32) -> (i32, i32) {
    %c0_i32 = arith.constant 0 : i32
    %c0_i32_0 = arith.constant 0 : i32
    %c0_i32_1 = arith.constant 0 : i32
    return %c0_i32, %c0_i32_0 : i32, i32
  }
  func.func @transform_12(%arg0: i32, %arg1: i32) -> (i32, i32) {
    %c0_i32 = arith.constant 0 : i32
    %c0_i32_0 = arith.constant 0 : i32
    %c0_i32_1 = arith.constant 0 : i32
    return %c0_i32, %c0_i32_0 : i32, i32
  }
  func.func @transform_13(%arg0: i32, %arg1: i32) -> (i32, i32) {
    %c0_i32 = arith.constant 0 : i32
    %c0_i32_0 = arith.constant 0 : i32
    %c0_i32_1 = arith.constant 0 : i32
    return %c0_i32, %c0_i32_0 : i32, i32
  }
  func.func @transform_14(%arg0: i32, %arg1: i32) -> (i32, i32) {
    %c0_i32 = arith.constant 0 : i32
    %c0_i32_0 = arith.constant 0 : i32
    %c0_i32_1 = arith.constant 0 : i32
    return %c0_i32, %c0_i32_0 : i32, i32
  }
  func.func @transform_15(%arg0: i32, %arg1: i32) -> (i32, i32) {
    %c0_i32 = arith.constant 0 : i32
    %c0_i32_0 = arith.constant 0 : i32
    %c0_i32_1 = arith.constant 0 : i32
    return %c0_i32, %c0_i32_0 : i32, i32
  }
  func.func @transform_16(%arg0: i32, %arg1: i32) -> (i32, i32) {
    %c0_i32 = arith.constant 0 : i32
    %c0_i32_0 = arith.constant 0 : i32
    %c0_i32_1 = arith.constant 0 : i32
    return %c0_i32, %c0_i32_0 : i32, i32
  }
  func.func @transform_17(%arg0: i32, %arg1: i32) -> (i32, i32, i32) {
    %c0_i32 = arith.constant 0 : i32
    %c0_i32_0 = arith.constant 0 : i32
    %c0_i32_1 = arith.constant 0 : i32
    return %arg0, %c0_i32, %c0_i32_0 : i32, i32, i32
  }
}

</mosaic_0001>

<bundles_post_ra>
// kernel: nn_hm_forward.1
= control target key start
LH: loop header
LB: loop body
LE: loop exit
PB: predicated region body
PF: predicated region fallthrough
CT: control target
= control target key end

     0   :  { %s4115_s24 = smov 0   ;;  %s4117_s25 = smov 0   ;;  %s5470_s0 = inlined_call_operand.vmem [shape: bf16[2,2,160,9], index: 0, kind: input, shape index: {}]   ;;  %s5471_s1 = inlined_call_operand.vmem [shape: bf16[3,9,16], index: 1, kind: input, shape index: {}]   ;;  %s5472_s2 = inlined_call_operand.vmem [shape: f32[1,16], index: 2, kind: input, shape index: {}]   ;;  %s5473_s3 = inlined_call_operand.vmem [shape: bf16[16,128], index: 3, kind: input, shape index: {}]   ;;  %s5474_s4 = inlined_call_operand.vmem [shape: f32[1,128], index: 4, kind: input, shape index: {}]   ;;  %s5475_s5 = inlined_call_operand.vmem [shape: f32[2,8], index: 5, kind: input, shape index: {}]   ;;  %s5476_s6 = inlined_call_operand.vmem [shape: bf16[8,16], index: 6, kind: input, shape index: {}]   ;;  %s5477_s7 = inlined_call_operand.vmem [shape: f32[1,16], index: 7, kind: input, shape index: {}]   ;;  %s5478_s8 = inlined_call_operand.vmem [shape: bf16[16,32], index: 8, kind: input, shape index: {}]   ;;  %s5479_s9 = inlined_call_operand.vmem [shape: f32[1,32], index: 9, kind: input, shape index: {}]   ;;  %s5480_s10 = inlined_call_operand.vmem [shape: bf16[128,512], index: 10, kind: input, shape index: {}]   ;;  %s5481_s11 = inlined_call_operand.vmem [shape: bf16[32,512], index: 11, kind: input, shape index: {}]   ;;  %s5482_s12 = inlined_call_operand.vmem [shape: f32[1,512], index: 12, kind: input, shape index: {}]   ;;  %s5483_s13 = inlined_call_operand.vmem [shape: bf16[512,512], index: 13, kind: input, shape index: {}]   ;;  %s5484_s14 = inlined_call_operand.vmem [shape: f32[1,512], index: 14, kind: input, shape index: {}]   ;;  %s5485_s15 = inlined_call_operand.vmem [shape: bf16[512,128], index: 15, kind: input, shape index: {}]   ;;  %s5486_s16 = inlined_call_operand.vmem [shape: f32[1,128], index: 16, kind: input, shape index: {}]   ;;  %s5487_s17 = inlined_call_operand.vmem [shape: f32[2,8,128], index: 17, kind: output, shape index: {}]  }
   0x1   :  { %5492 = sst [smem:[#allocation8_spill]] %s5470_s0  ;;  %s4119_s26 = smov 0  }
   0x2   :  { %5493 = sst [smem:[#allocation9_spill]] %s5471_s1  ;;  %s4121_s27 = smov 0  }
   0x3   :  { %5494 = sst [smem:[#allocation10_spill]] %s5484_s14  ;;  %s4123_s28 = smov 0  }
   0x4   :  { %5495 = sst [smem:[#allocation11_spill]] %s5486_s16 }
   0x5 LB: > { %5496 = sst [smem:[#allocation3_spill]] %s4013_s26  ;;  %s36_s29 = sadd.s32 1, %s4013_s26  ;;  %s4021_s28 = sphi %s4123_s28, %s27_s28   ;;  %s4017_s27 = sphi %s4121_s27, %s5509_s27   ;;  %s4013_s26 = sphi %s4119_s26, %s5508_s26   ;;  %s4009_s25 = sphi %s4117_s25, %s5507_s25   ;;  %s4005_s24 = sphi %s4115_s24, %s5506_s24  }
   0x6   : > { %5497 = sst [smem:[#allocation4_spill]] %s4017_s27  ;;  %s39_s0 = sadd.s32 1, %s4017_s27 }
   0x7   : > { %5498 = sst [smem:[#allocation5_spill]] %s4021_s28  ;;  %p37_p0 = scmp.ge.s32.totalorder %s36_s29, 2 }
   0x8   : > { %p2813_p1 = scmp.ge.s32.totalorder %s4021_s28, 1  ;;  %p505_p2 = scmp.lt.s32.totalorder %s4021_s28, 5 }
   0x9   : > { %s5511_s29 = smov (%p37_p0, %s36_s29), 0  ;;  %s5513_s0 = smov (!%p37_p0, %s39_s0), %s4017_s27 }
   0xa   : > { %5499 = sst [smem:[#allocation6_spill]] %s5511_s29  ;;  %p506_p3 = pnand %p2813_p1, %p505_p2 }
   0xb   : > { %p41_p4 = scmp.ge.s32.totalorder %s5513_s0, 2  ;;  %p560_p5 = scmp.lt.s32.totalorder (!%p506_p3), %s4009_s25, 1 }
   0xc   : > { %509 = sbr.rel (%p506_p3) target bundleno = 1075 (0x433), region = 88  ;;  %p562_p6 = scmp.lt.s32.totalorder (!%p506_p3), %s4005_s24, 1 }
   0xd   : > { %s5515_s0 = smov (%p41_p4, %s5513_s0), 0  ;;  %s5501_s28 = sld [smem:[#allocation8_spill]] (!%p506_p3) }
   0xe   : > { %5500 = sst [smem:[#allocation7_spill]] %s5515_s0  ;;  %p2816_p7 = scmp.ne.s32.totalorder (!%p506_p3), %s4005_s24, 0 }
  0x11   : > { %s561_s30 = scalar_select %p560_p5, %s4009_s25, 1 }
  0x12   : > { %s563_s18 = scalar_select %p562_p6, %s4005_s24, 1 }
  0x13   : > { %s3934_s19 = smul.u32 40, %s561_s30  ;;  %s2815_s1 = sshll.u32 %s561_s30, 3 }
  0x14   : > { %s3933_s20 = smul.u32 20, %s563_s18  ;;  %s4156_s23 = scalar_lea.vmem %s5487_s17, %s2815_s1 }
  0x15   : > { %577 = sbr.rel (%p2816_p7) target bundleno = 28 (0x1c), region = 92 }
  0x16   : > { %s566_s29 = sadd.s32 %s3934_s19, %s3933_s20 }
  0x17   : > { %s2814_s27 = sshll.u32 %s566_s29, 2 }
  0x18   : > { %s4161_s16 = scalar_lea.vmem %s5501_s28, %s2814_s27 }
  0x1a   : > { %vm578_vm0 = vcmask 122880   ;;  %v4023_v0 = vmov 0.0  }
  0x1b   : > { %579 = vst.msk [vmem:[#allocation2] sm:$0x1] %vm578_vm0, %v4023_v0 }
  0x1c PF: > { %s5502_s14 = sld [smem:[#allocation9_spill]]  ;;  %vm675_vm1 = vcmask 1043456   ;;  %vm676_vm2 = vcmask 1044480   ;;  %v4024_v6 = vmov 65535   ;;  %v3716_v16 = vld [vmem:[%s4161_s16 + $0x8] sm:$0xff]  ;;  %v3722_v17 = vld [vmem:[%s4161_s16 + $0x38] sm:$0xff] }
  0x1d   : > { %v677_v7 = vsel %vm675_vm1, 4294967295, %v4024_v6  ;;  %vm650_vm3 = vcmask 72704   ;;  %v3715_v18 = vld [vmem:[%s4161_s16] sm:$0xff]  ;;  %v3717_v19 = vld [vmem:[%s4161_s16 + $0x10] sm:$0xff]  ;;  %v3718_v21 = vld [vmem:[%s4161_s16 + $0x18] sm:$0xff]  ;;  %vm917_vm4 = vcmask 130048  }
  0x1e   : > { %v678_v11 = vsel %vm676_vm2, %v677_v7, 0  ;;  %v3723_v20 = vld [vmem:[%s4161_s16 + $0x40] sm:$0xff]  ;;  %v3721_v22 = vld [vmem:[%s4161_s16 + $0x30] sm:$0xff]  ;;  %v3720_v24 = vld [vmem:[%s4161_s16 + $0x28] sm:$0xff]  ;;  %vm956_vm5 = vcmask 122880   ;;  %p2897_p8 = scmp.ne.s32.totalorder %s4005_s24, 1 }
  0x1f   : > { %v3719_v23 = vld [vmem:[%s4161_s16 + $0x20] sm:$0xff]  ;;  %v3724_v25 = vld [vmem:[%s4161_s16 + $0x48] sm:$0xff]  ;;  %s996_s27 = scalar_lea.vmem (!%p2897_p8), %s5475_s5, %s4009_s25  ;;  %s5503_s24 = sld [smem:[#allocation10_spill]] (!%p2897_p8) }
  0x20   : > { %s5504_s0 = sld [smem:[#allocation11_spill]] (!%p2897_p8) }
  0x22   : > { %v2853_v1 = vld [vmem:[%s5502_s14 + $0x8] sm:$0xf]  ;;  %v3726_v2 = vld [vmem:[%s5502_s14 + $0x8] sm:$0x10]  ;;  %v2869_v4 = vld [vmem:[%s5502_s14] sm:$0xf] }
  0x23   : > { %v2854_v3 = vor.u32 %v3726_v2, %v2853_v1  ;;  %v3725_v5 = vld [vmem:[%s5502_s14] sm:$0x10]  ;;  %v2887_v9 = vld [vmem:[%s5502_s14 + $0x10] sm:$0xf]  ;;  %v3727_v10 = vld [vmem:[%s5502_s14 + $0x10] sm:$0x10] }
  0x24   : > { %v2870_v8 = vor.u32 %v3725_v5, %v2869_v4  ;;  %v2888_v12 = vor.u32 %v3727_v10, %v2887_v9  ;;  %v4236_v1 = vld [vmem:[%s5472_s2] ss:$0 sm:$0xff] }
  0x25   : > { %v680_v13 = vand.u32 %v2854_v3, %v678_v11 }
  0x26   : > { %v745_v14 = vand.u32 %v2870_v8, %v678_v11  ;;  %v813_v15 = vand.u32 %v2888_v12, %v678_v11 }
  0x27   : > { %689 = vmatpush.bf16.msra.mxu0 %v680_v13  ;;  %3930 = vmatpush.bf16.msra.mxu3 %v680_v13 }
  0x28   : > { %754 = vmatpush.bf16.msra.mxu1 %v745_v14  ;;  %822 = vmatpush.bf16.msra.mxu2 %v813_v15 }
  0x2a   : > { %2855 = vmatmul.msk.bf16.vlgmr.msra.gmra.mxu0 %vm650_vm3, %v3716_v16  ;;  %2861 = vmatmul.msk.bf16.vlgmr.msra.gmra.mxu3 %vm650_vm3, %v3722_v17 }
  0x2b   : > { %3931 = vmatpush.bf16.msrb.mxu3 %v745_v14  ;;  %2871 = vmatmul.msk.bf16.vlgmr.msra.gmra.mxu1 %vm650_vm3, %v3715_v18 }
  0x2c   : > { %2889 = vmatmul.msk.bf16.vlgmr.msra.gmra.mxu2 %vm650_vm3, %v3717_v19 }
  0x2f   : > { %3932 = vmatpush.bf16.msra.mxu3 %v813_v15 }
  0x3a   : > { %2856 = vmatmul.msk.bf16.gmra.mxu0 %vm650_vm3, %v3717_v19  ;;  %2862 = vmatmul.msk.bf16.gmra.mxu3 %vm650_vm3, %v3723_v20 }
  0x3b   : > { %2872 = vmatmul.msk.bf16.gmra.mxu1 %vm650_vm3, %v3716_v16 }
  0x3c   : > { %2890 = vmatmul.msk.bf16.gmra.mxu2 %vm650_vm3, %v3718_v21 }
  0x4a   : > { %2857 = vmatmul.msk.bf16.gmra.mxu0 %vm650_vm3, %v3718_v21  ;;  %2877 = vmatmul.msk.bf16.vlgmr.msrb.gmra.mxu3 %vm650_vm3, %v3721_v22 }
  0x4b   : > { %2873 = vmatmul.msk.bf16.gmra.mxu1 %vm650_vm3, %v3717_v19 }
  0x4c   : > { %2891 = vmatmul.msk.bf16.gmra.mxu2 %vm650_vm3, %v3719_v23 }
  0x5a   : > { %2858 = vmatmul.msk.bf16.gmra.mxu0 %vm650_vm3, %v3719_v23  ;;  %2878 = vmatmul.msk.bf16.gmra.mxu3 %vm650_vm3, %v3722_v17 }
  0x5b   : > { %2874 = vmatmul.msk.bf16.gmra.mxu1 %vm650_vm3, %v3718_v21 }
  0x5c   : > { %2892 = vmatmul.msk.bf16.gmra.mxu2 %vm650_vm3, %v3720_v24 }
  0x6a   : > { %2859 = vmatmul.msk.bf16.gmra.mxu0 %vm650_vm3, %v3720_v24  ;;  %2895 = vmatmul.msk.bf16.vlgmr.msra.gmra.mxu3 %vm650_vm3, %v3723_v20 }
  0x6b   : > { %2875 = vmatmul.msk.bf16.gmra.mxu1 %vm650_vm3, %v3719_v23 }
  0x6c   : > { %2893 = vmatmul.msk.bf16.gmra.mxu2 %vm650_vm3, %v3721_v22 }
  0x7a   : > { %2860 = vmatmul.msk.bf16.gmra.mxu0 %vm650_vm3, %v3721_v22  ;;  %2896 = vmatmul.msk.bf16.gmra.mxu3 %vm650_vm3, %v3724_v25 }
  0x7b   : > { %2876 = vmatmul.msk.bf16.gmra.mxu1 %vm650_vm3, %v3720_v24 }
  0x7c   : > { %2894 = vmatmul.msk.bf16.gmra.mxu2 %vm650_vm3, %v3722_v17 }
  0xa7   : > { %v691_v26 = vpop.f32.mrf.mxu0 }
  0xa8   : > { %v756_v27 = vpop.f32.mrf.mxu1 }
  0xa9   : > { %v757_v28 = vadd.f32 %v756_v27, %v691_v26 }
  0xad   : > { %v4217_v29 = vpop.f32.mrf.mxu3 }
  0xaf   : > { %v824_v30 = vpop.f32.mrf.mxu2  ;;  %v693_v32 = vpop.f32.mrf.mxu0 }
  0xb0   : > { %v864_v31 = vadd.f32 %v824_v30, %v757_v28  ;;  %v758_v33 = vpop.f32.mrf.mxu1 }
  0xb1   : > { %v759_v63 = vadd.f32 %v758_v33, %v693_v32 }
  0xb2   : > { %v884_v10 = vadd.f32 %v4236_v1, %v864_v31 }
  0xb4   : > { %v900_v19 = vmax.f32 %v884_v10, 0.0 }
  0xb5   : > { %v4219_v34 = vpop.f32.mrf.mxu3 }
  0xb6   : > { %v918_v32 = vsel %vm917_vm4, %v900_v19, 0.0 }
  0xb7   : > { %v826_v35 = vpop.f32.mrf.mxu2  ;;  %v696_v36 = vpop.f32.mrf.mxu0 }
  0xb8   : > { %v761_v37 = vpop.f32.mrf.mxu1  ;;  %v865_v0 = vadd.f32 %v826_v35, %v759_v63 }
  0xb9   : > { %v762_v61 = vadd.f32 %v761_v37, %v696_v36 }
  0xba   : > { %v885_v8 = vadd.f32 %v4236_v1, %v865_v0 }
  0xbc   : > { %v901_v17 = vmax.f32 %v885_v8, 0.0 }
  0xbd   : > { %v4221_v38 = vpop.f32.mrf.mxu3 }
  0xbe   : > { %v919_v28 = vsel %vm917_vm4, %v901_v17, 0.0 }
  0xbf   : > { %v829_v39 = vpop.f32.mrf.mxu2  ;;  %v698_v40 = vpop.f32.mrf.mxu0 }
  0xc0   : > { %v763_v41 = vpop.f32.mrf.mxu1  ;;  %v866_v2 = vadd.f32 %v829_v39, %v762_v61 }
  0xc1   : > { %v764_v3 = vadd.f32 %v763_v41, %v698_v40 }
  0xc2   : > { %v886_v11 = vadd.f32 %v4236_v1, %v866_v2 }
  0xc4   : > { %v902_v20 = vmax.f32 %v886_v11, 0.0 }
  0xc5   : > { %v4223_v42 = vpop.f32.mrf.mxu3 }
  0xc6   : > { %v921_v33 = vsel %vm917_vm4, %v902_v20, 0.0 }
  0xc7   : > { %v831_v43 = vpop.f32.mrf.mxu2  ;;  %v701_v44 = vpop.f32.mrf.mxu0 }
  0xc8   : > { %v766_v45 = vpop.f32.mrf.mxu1  ;;  %v867_v6 = vadd.f32 %v831_v43, %v764_v3  ;;  %v920_v43 = vadd.f32 %v919_v28, %v918_v32 }
  0xc9   : > { %v767_v4 = vadd.f32 %v766_v45, %v701_v44 }
  0xca   : > { %v887_v16 = vadd.f32 %v4236_v1, %v867_v6 }
  0xcc   : > { %v903_v26 = vmax.f32 %v887_v16, 0.0 }
  0xcd   : > { %v4225_v46 = vpop.f32.mrf.mxu3 }
  0xce   : > { %v923_v44 = vsel %vm917_vm4, %v903_v26, 0.0  ;;  %v787_v2 = vadd.f32 %v4225_v46, %v4217_v29 }
  0xcf   : > { %v834_v47 = vpop.f32.mrf.mxu2  ;;  %v703_v48 = vpop.f32.mrf.mxu0 }
  0xd0   : > { %v768_v49 = vpop.f32.mrf.mxu1  ;;  %v868_v13 = vadd.f32 %v834_v47, %v767_v4 }
  0xd1   : > { %v769_v14 = vadd.f32 %v768_v49, %v703_v48 }
  0xd2   : > { %v888_v21 = vadd.f32 %v4236_v1, %v868_v13 }
  0xd4   : > { %v904_v37 = vmax.f32 %v888_v21, 0.0 }
  0xd5   : > { %v4227_v50 = vpop.f32.mrf.mxu3 }
  0xd6   : > { %v789_v10 = vadd.f32 %v4227_v50, %v4219_v34 }
  0xd7   : > { %v836_v51 = vpop.f32.mrf.mxu2  ;;  %v706_v52 = vpop.f32.mrf.mxu0 }
  0xd8   : > { %v771_v53 = vpop.f32.mrf.mxu1  ;;  %v869_v18 = vadd.f32 %v836_v51, %v769_v14  ;;  %v922_v51 = vadd.f32 %v921_v33, %v920_v43 }
  0xd9   : > { %v772_v15 = vadd.f32 %v771_v53, %v706_v52  ;;  %v925_v52 = vsel %vm917_vm4, %v904_v37, 0.0 }
  0xda   : > { %v889_v30 = vadd.f32 %v4236_v1, %v869_v18 }
  0xdc   : > { %v905_v45 = vmax.f32 %v889_v30, 0.0 }
  0xdd   : > { %v4229_v54 = vpop.f32.mrf.mxu3 }
  0xde   : > { %v792_v14 = vadd.f32 %v4229_v54, %v4221_v38 }
  0xdf   : > { %v839_v55 = vpop.f32.mrf.mxu2  ;;  %v708_v56 = vpop.f32.mrf.mxu0 }
  0xe0   : > { %v773_v57 = vpop.f32.mrf.mxu1  ;;  %v870_v22 = vadd.f32 %v839_v55, %v772_v15 }
  0xe1   : > { %v774_v23 = vadd.f32 %v773_v57, %v708_v56  ;;  %v924_v57 = vadd.f32 %v923_v44, %v922_v51 }
  0xe2   : > { %v890_v39 = vadd.f32 %v4236_v1, %v870_v22 }
  0xe3   : > { %v926_v0 = vadd.f32 %v925_v52, %v924_v57 }
  0xe4   : > { %v906_v53 = vmax.f32 %v890_v39, 0.0 }
  0xe5   : > { %v4231_v58 = vpop.f32.mrf.mxu3 }
  0xe6   : > { %v929_v3 = vsel %vm917_vm4, %v906_v53, 0.0  ;;  %v794_v18 = vadd.f32 %v4231_v58, %v4223_v42  ;;  %v916_v53 = vld [vmem:[#allocation2] sm:$0x1] }
  0xe7   : > { %v841_v59 = vpop.f32.mrf.mxu2  ;;  %v711_v60 = vpop.f32.mrf.mxu0 }
  0xe8   : > { %v776_v62 = vpop.f32.mrf.mxu1  ;;  %v871_v31 = vadd.f32 %v841_v59, %v774_v23 }
  0xe9   : > { %v777_v24 = vadd.f32 %v776_v62, %v711_v60  ;;  %v927_v60 = vsel %vm917_vm4, %v905_v45, 0.0 }
  0xea   : > { %v891_v47 = vadd.f32 %v4236_v1, %v871_v31 }
  0xec   : > { %v907_v61 = vmax.f32 %v891_v47, 0.0 }
  0xed   : > { %v854_v5 = vpop.f32.mrf.mxu3 }
  0xee   : > { %v931_v11 = vsel %vm917_vm4, %v907_v61, 0.0 }
  0xef   : > { %v844_v7 = vpop.f32.mrf.mxu2  ;;  %v713_v9 = vpop.f32.mrf.mxu0 }
  0xf0   : > { %v778_v12 = vpop.f32.mrf.mxu1  ;;  %v872_v40 = vadd.f32 %v844_v7, %v777_v24  ;;  %v928_v7 = vadd.f32 %v927_v60, %v926_v0 }
  0xf1   : > { %v779_v41 = vadd.f32 %v778_v12, %v713_v9  ;;  %v876_v12 = vadd.f32 %v854_v5, %v787_v2 }
  0xf2   : > { %v892_v55 = vadd.f32 %v4236_v1, %v872_v40  ;;  %v930_v15 = vadd.f32 %v929_v3, %v928_v7 }
  0xf3   : > { %v896_v34 = vadd.f32 %v4236_v1, %v876_v12 }
  0xf4   : > { %v908_v4 = vmax.f32 %v892_v55, 0.0  ;;  %v932_v19 = vadd.f32 %v931_v11, %v930_v15 }
  0xf5   : > { %v856_v25 = vpop.f32.mrf.mxu3 }
  0xf6   : > { %v933_v29 = vsel %vm917_vm4, %v908_v4, 0.0  ;;  %v877_v46 = vadd.f32 %v856_v25, %v789_v10 }
  0xf7   : > { %v846_v27 = vpop.f32.mrf.mxu2  ;;  %v716_v35 = vpop.f32.mrf.mxu0  ;;  %v934_v23 = vadd.f32 %v933_v29, %v932_v19 }
  0xf8   : > { %v781_v36 = vpop.f32.mrf.mxu1  ;;  %v873_v48 = vadd.f32 %v846_v27, %v779_v41  ;;  %v897_v38 = vadd.f32 %v4236_v1, %v877_v46  ;;  %v912_v27 = vmax.f32 %v896_v34, 0.0 }
  0xf9   : > { %v782_v49 = vadd.f32 %v781_v36, %v716_v35 }
  0xfa   : > { %v893_v62 = vadd.f32 %v4236_v1, %v873_v48  ;;  %v913_v30 = vmax.f32 %v897_v38, 0.0  ;;  %v941_v35 = vsel %vm917_vm4, %v912_v27, 0.0 }
  0xfc   : > { %v909_v13 = vmax.f32 %v893_v62, 0.0  ;;  %v943_v39 = vsel %vm917_vm4, %v913_v30, 0.0 }
  0xfd   : > { %v859_v56 = vpop.f32.mrf.mxu3 }
  0xfe   : > { %v935_v50 = vsel %vm917_vm4, %v909_v13, 0.0  ;;  %v878_v5 = vadd.f32 %v859_v56, %v792_v14 }
  0xff   : > { %v849_v59 = vpop.f32.mrf.mxu2  ;;  %v718_v8 = vpop.f32.mrf.mxu0  ;;  %v936_v26 = vadd.f32 %v935_v50, %v934_v23 }
 0x100   : > { %v874_v63 = vadd.f32 %v849_v59, %v782_v49  ;;  %v783_v9 = vpop.f32.mrf.mxu1  ;;  %v898_v42 = vadd.f32 %v4236_v1, %v878_v5 }
 0x101   : > { %v784_v17 = vadd.f32 %v783_v9, %v718_v8 }
 0x102   : > { %v894_v6 = vadd.f32 %v4236_v1, %v874_v63  ;;  %v914_v36 = vmax.f32 %v898_v42, 0.0 }
 0x104   : > { %v910_v16 = vmax.f32 %v894_v6, 0.0  ;;  %v945_v43 = vsel %vm917_vm4, %v914_v36, 0.0 }
 0x105   : > { %v861_v21 = vpop.f32.mrf.mxu3 }
 0x106   : > { %v937_v54 = vsel %vm917_vm4, %v910_v16, 0.0  ;;  %v879_v25 = vadd.f32 %v861_v21, %v794_v18 }
 0x107   : > { %v851_v20 = vpop.f32.mrf.mxu2  ;;  %v938_v28 = vadd.f32 %v937_v54, %v936_v26 }
 0x108   : > { %v875_v22 = vadd.f32 %v851_v20, %v784_v17  ;;  %v899_v32 = vadd.f32 %v4236_v1, %v879_v25 }
 0x10a   : > { %v895_v24 = vadd.f32 %v4236_v1, %v875_v22  ;;  %v915_v40 = vmax.f32 %v899_v32, 0.0 }
 0x10c   : > { %v911_v58 = vmax.f32 %v895_v24, 0.0  ;;  %v947_v45 = vsel %vm917_vm4, %v915_v40, 0.0 }
 0x10e   : > { %v939_v31 = vsel %vm917_vm4, %v911_v58, 0.0 }
 0x10f   : > { %v940_v33 = vadd.f32 %v939_v31, %v938_v28 }
 0x111   : > { %v942_v37 = vadd.f32 %v941_v35, %v940_v33 }
 0x113   : > { %v944_v41 = vadd.f32 %v943_v39, %v942_v37 }
 0x115   : > { %v946_v44 = vadd.f32 %v945_v43, %v944_v41 }
 0x117   : > { %v948_v47 = vadd.f32 %v947_v45, %v946_v44 }
 0x119   : > { %v949_v48 = vrot.slane %v948_v47, 4 }
 0x11b   : > { %v950_v49 = vadd.f32 %v949_v48, %v948_v47 }
 0x11d   : > { %v951_v51 = vrot.slane %v950_v49, 2 }
 0x11f   : > { %v952_v52 = vadd.f32 %v951_v51, %v950_v49 }
 0x121   : > { %v953_v1 = vrot.slane %v952_v52, 1 }
 0x123   : > { %v954_v55 = vadd.f32 %v953_v1, %v952_v52  ;;  %961 = sbr.rel (%p2897_p8) target bundleno = 1075 (0x433), region = 96 }
 0x125   : > { %v955_v56 = vadd.f32 %v954_v55, %v916_v53 }
 0x127   : > { %957 = vst.msk [vmem:[#allocation2] sm:$0x1] %vm956_vm5, %v955_v56 }
 0x128   : > { %v1000_v57 = vld [vmem:[%s5476_s6] sm:$0xf]  ;;  %vm1005_vm6 = vcmask 64512   ;;  %v3768_v4 = vld [vmem:[%s5481_s11 + $0x2c] sm:$0xf0]  ;;  %vm1138_vm7 = vcmask 261120  }
 0x129   : > { %v1010_v59 = vsel %vm675_vm1, %v1000_v57, 0  ;;  %v3978_v60 = vld [vmem:[%s996_s27] ss:$0 sm:$0xff]  ;;  %v3766_v6 = vld [vmem:[%s5481_s11 + $0x24] sm:$0xf] }
 0x12a   : > { %1019 = vmatpush.bf16.msra.mxu1 %v1010_v59  ;;  %v999_v61 = vpack.c.bf16 %v3978_v60, %v3978_v60  ;;  %v3729_v62 = vld [vmem:[%s5478_s8] sm:$0xff]  ;;  %v2929_v8 = vld [vmem:[%s5481_s11 + $0x30] sm:$0xf0]  ;;  %v2935_v9 = vld [vmem:[%s5481_s11 + $0x28] sm:$0xf] }
 0x12b   : > { %1049 = vmatpush.bf16.msra.mxu2 %v3729_v62  ;;  %v3728_v63 = vld [vmem:[%s5473_s3] sm:$0xff]  ;;  %v3769_v10 = vld [vmem:[%s5481_s11 + $0x34] sm:$0xf0]  ;;  %v2932_v12 = vor.u32 %v3766_v6, %v2929_v8  ;;  %v3767_v14 = vld [vmem:[%s5481_s11 + $0x2c] sm:$0xf] }
 0x12c   : > { %v2927_v2 = vld [vmem:[%s5481_s11 + $0x20] sm:$0xf]  ;;  %990 = vmatpush.bf16.msra.mxu0 %v3728_v63  ;;  %v2936_v13 = vor.u32 %v3769_v10, %v2935_v9  ;;  %v2937_v15 = vld [vmem:[%s5481_s11 + $0x38] sm:$0xf0]  ;;  %v3764_v16 = vld [vmem:[%s5481_s11 + $0xc] sm:$0xf0] }
 0x12d   : > { %2903 = vmatmul.msk.bf16.vlgmr.msra.gmra.mxu1 %vm1005_vm6, %v999_v61  ;;  %v2928_v7 = vor.u32 %v3768_v4, %v2927_v2  ;;  %v2940_v29 = vor.u32 %v3767_v14, %v2937_v15  ;;  %v2911_v46 = vld [vmem:[%s5481_s11] sm:$0xf]  ;;  %v3762_v17 = vld [vmem:[%s5481_s11 + $0x4] sm:$0xf]  ;;  %v2913_v20 = vld [vmem:[%s5481_s11 + $0x10] sm:$0xf0] }
 0x12e   : > { %v962_v0 = vld [vmem:[#allocation2] sm:$0x1]  ;;  %1174 = vmatpush.bf16.msrb.mxu1 %v2936_v13  ;;  %v2912_v19 = vor.u32 %v3764_v16, %v2911_v46  ;;  %v2919_v21 = vld [vmem:[%s5481_s11 + $0x8] sm:$0xf]  ;;  %v3765_v34 = vld [vmem:[%s5481_s11 + $0x14] sm:$0xf0]  ;;  %v2916_v50 = vor.u32 %v3762_v17, %v2913_v20 }
 0x12f   : > { %v963_v3 = vmul.f32 0.00390625, %v962_v0  ;;  %1148 = vmatpush.bf16.msra.mxu3 %v2928_v7  ;;  %1187 = vmatpush.bf16.msrb.mxu2 %v2940_v29  ;;  %v2920_v5 = vor.u32 %v3765_v34, %v2919_v21  ;;  %v3763_v22 = vld [vmem:[%s5481_s11 + $0xc] sm:$0xf]  ;;  %v2921_v23 = vld [vmem:[%s5481_s11 + $0x18] sm:$0xf0] }
 0x130   : > { %1161 = vmatpush.bf16.msrb.mxu0 %v2932_v12  ;;  %v3059_v38 = vld [vmem:[%s5480_s10 + $0xe0] sm:$0xf]  ;;  %v2924_v54 = vor.u32 %v3763_v22, %v2921_v23  ;;  %v3760_v24 = vld [vmem:[%s5480_s10 + $0xec] sm:$0xf0]  ;;  %v3758_v25 = vld [vmem:[%s5480_s10 + $0xe4] sm:$0xf] }
 0x131   : > { %v965_v11 = vperm.slane %v963_v3, 0  ;;  %v3061_v26 = vld [vmem:[%s5480_s10 + $0xf0] sm:$0xf0]  ;;  %v3060_v27 = vor.u32 %v3760_v24, %v3059_v38  ;;  %v3067_v58 = vld [vmem:[%s5480_s10 + $0xe8] sm:$0xf] }
 0x132   : > { %v3064_v42 = vor.u32 %v3758_v25, %v3061_v26  ;;  %v3761_v28 = vld [vmem:[%s5480_s10 + $0xf4] sm:$0xf0]  ;;  %1175 = vmatpush.bf16.msrb.mxu1 %v2920_v5  ;;  %v3043_v31 = vld [vmem:[%s5480_s10 + $0xc0] sm:$0xf]  ;;  %v3756_v32 = vld [vmem:[%s5480_s10 + $0xcc] sm:$0xf0] }
 0x133   : > { %v967_v18 = vpack.c.bf16 %v965_v11, %v965_v11  ;;  %1149 = vmatpush.bf16.msra.mxu3 %v2912_v19  ;;  %v3068_v30 = vor.u32 %v3761_v28, %v3067_v58  ;;  %1188 = vmatpush.bf16.msrb.mxu2 %v2924_v54  ;;  %v3044_v33 = vor.u32 %v3756_v32, %v3043_v31  ;;  %v3754_v35 = vld [vmem:[%s5480_s10 + $0xc4] sm:$0xf]  ;;  %v3045_v36 = vld [vmem:[%s5480_s10 + $0xd0] sm:$0xf0]  ;;  %v3051_v37 = vld [vmem:[%s5480_s10 + $0xc8] sm:$0xf] }
 0x134   : > { %1162 = vmatpush.bf16.msrb.mxu0 %v2916_v50  ;;  %v3048_v39 = vor.u32 %v3754_v35, %v3045_v36  ;;  %v3757_v40 = vld [vmem:[%s5480_s10 + $0xd4] sm:$0xf0]  ;;  %v3979_v43 = vld [vmem:[%s5477_s7] ss:$0 sm:$0xff]  ;;  %v3759_v47 = vld [vmem:[%s5480_s10 + $0xec] sm:$0xf] }
 0x135   : > { %2902 = vmatmul.msk.bf16.vlgmr.msra.gmra.mxu0 %vm917_vm4, %v967_v18  ;;  %v3052_v41 = vor.u32 %v3757_v40, %v3051_v37  ;;  %v3069_v48 = vld [vmem:[%s5480_s10 + $0xf8] sm:$0xf0]  ;;  %v3755_v1 = vld [vmem:[%s5480_s10 + $0xcc] sm:$0xf]  ;;  %v3027_v57 = vld [vmem:[%s5480_s10 + $0xa0] sm:$0xf] }
 0x136   : > { %1380 = vmatpush.bf16.msra.mxu1 %v3068_v30  ;;  %v3072_v51 = vor.u32 %v3759_v47, %v3069_v48  ;;  %v3053_v53 = vld [vmem:[%s5480_s10 + $0xd8] sm:$0xf0]  ;;  %v3752_v59 = vld [vmem:[%s5480_s10 + $0xac] sm:$0xf0]  ;;  %v3750_v60 = vld [vmem:[%s5480_s10 + $0xa4] sm:$0xf] }
 0x137   : > { %1354 = vmatpush.bf16.msrb.mxu3 %v3060_v27  ;;  %v3056_v56 = vor.u32 %v3755_v1, %v3053_v53  ;;  %v3028_v61 = vor.u32 %v3752_v59, %v3027_v57  ;;  %v3029_v62 = vld [vmem:[%s5480_s10 + $0xb0] sm:$0xf0]  ;;  %v3035_v63 = vld [vmem:[%s5480_s10 + $0xa8] sm:$0xf]  ;;  %v3753_v0 = vld [vmem:[%s5480_s10 + $0xb4] sm:$0xf0] }
 0x138   : > { %1367 = vmatpush.bf16.msra.mxu0 %v3064_v42  ;;  %v3032_v2 = vor.u32 %v3750_v60, %v3029_v62  ;;  %v3036_v3 = vor.u32 %v3753_v0, %v3035_v63  ;;  %v3751_v4 = vld [vmem:[%s5480_s10 + $0xac] sm:$0xf]  ;;  %v3037_v6 = vld [vmem:[%s5480_s10 + $0xb8] sm:$0xf0]  ;;  %v3011_v8 = vld [vmem:[%s5480_s10 + $0x80] sm:$0xf] }
 0x139   : > { %v3040_v7 = vor.u32 %v3751_v4, %v3037_v6  ;;  %v3748_v9 = vld [vmem:[%s5480_s10 + $0x8c] sm:$0xf0]  ;;  %v3746_v10 = vld [vmem:[%s5480_s10 + $0x84] sm:$0xf]  ;;  %v3013_v12 = vld [vmem:[%s5480_s10 + $0x90] sm:$0xf0] }
 0x13a   : > { %1381 = vmatpush.bf16.msra.mxu1 %v3052_v41  ;;  %v3012_v11 = vor.u32 %v3748_v9, %v3011_v8  ;;  %v3019_v13 = vld [vmem:[%s5480_s10 + $0x88] sm:$0xf]  ;;  %v3749_v14 = vld [vmem:[%s5480_s10 + $0x94] sm:$0xf0]  ;;  %v3016_v15 = vor.u32 %v3746_v10, %v3013_v12  ;;  %v3747_v46 = vld [vmem:[%s5480_s10 + $0x8c] sm:$0xf] }
 0x13b   : > { %1355 = vmatpush.bf16.msrb.mxu3 %v3044_v33  ;;  %v3020_v29 = vor.u32 %v3749_v14, %v3019_v13  ;;  %v3021_v16 = vld [vmem:[%s5480_s10 + $0x98] sm:$0xf0]  ;;  %v2995_v18 = vld [vmem:[%s5480_s10 + $0x60] sm:$0xf]  ;;  %v3744_v19 = vld [vmem:[%s5480_s10 + $0x6c] sm:$0xf0] }
 0x13c   : > { %1368 = vmatpush.bf16.msra.mxu0 %v3048_v39  ;;  %v3024_v17 = vor.u32 %v3747_v46, %v3021_v16  ;;  %v3742_v20 = vld [vmem:[%s5480_s10 + $0x64] sm:$0xf]  ;;  %v2996_v21 = vor.u32 %v3744_v19, %v2995_v18  ;;  %v2997_v34 = vld [vmem:[%s5480_s10 + $0x70] sm:$0xf0]  ;;  %v3003_v50 = vld [vmem:[%s5480_s10 + $0x68] sm:$0xf] }
 0x13d   : > { %v3745_v5 = vld [vmem:[%s5480_s10 + $0x74] sm:$0xf0]  ;;  %v3000_v22 = vor.u32 %v3742_v20, %v2997_v34  ;;  %v3743_v38 = vld [vmem:[%s5480_s10 + $0x6c] sm:$0xf]  ;;  %v3005_v54 = vld [vmem:[%s5480_s10 + $0x78] sm:$0xf0] }
 0x13e   : > { %1382 = vmatpush.bf16.msra.mxu1 %v3036_v3  ;;  %v3004_v23 = vor.u32 %v3745_v5, %v3003_v50  ;;  %v3008_v25 = vor.u32 %v3743_v38, %v3005_v54  ;;  %v2979_v26 = vld [vmem:[%s5480_s10 + $0x40] sm:$0xf]  ;;  %v3740_v27 = vld [vmem:[%s5480_s10 + $0x4c] sm:$0xf0]  ;;  %v3738_v42 = vld [vmem:[%s5480_s10 + $0x44] sm:$0xf] }
 0x13f   : > { %1356 = vmatpush.bf16.msrb.mxu3 %v3028_v61  ;;  %v2980_v58 = vor.u32 %v3740_v27, %v2979_v26  ;;  %v2981_v28 = vld [vmem:[%s5480_s10 + $0x50] sm:$0xf0]  ;;  %v2987_v30 = vld [vmem:[%s5480_s10 + $0x48] sm:$0xf]  ;;  %v3741_v31 = vld [vmem:[%s5480_s10 + $0x54] sm:$0xf0] }
 0x140   : > { %1369 = vmatpush.bf16.msra.mxu0 %v3032_v2  ;;  %v2984_v32 = vor.u32 %v3738_v42, %v2981_v28  ;;  %v2988_v33 = vor.u32 %v3741_v31, %v2987_v30  ;;  %v3739_v35 = vld [vmem:[%s5480_s10 + $0x4c] sm:$0xf]  ;;  %v2989_v36 = vld [vmem:[%s5480_s10 + $0x58] sm:$0xf0]  ;;  %v2963_v37 = vld [vmem:[%s5480_s10 + $0x20] sm:$0xf] }
 0x141   : > { %v2992_v39 = vor.u32 %v3739_v35, %v2989_v36  ;;  %v3736_v40 = vld [vmem:[%s5480_s10 + $0x2c] sm:$0xf0]  ;;  %v3734_v41 = vld [vmem:[%s5480_s10 + $0x24] sm:$0xf]  ;;  %v3737_v47 = vld [vmem:[%s5480_s10 + $0x34] sm:$0xf0] }
 0x142   : > { %1383 = vmatpush.bf16.msra.mxu1 %v3020_v29  ;;  %v3735_v48 = vld [vmem:[%s5480_s10 + $0x2c] sm:$0xf]  ;;  %v2947_v1 = vld [vmem:[%s5480_s10] sm:$0xf]  ;;  %v3732_v53 = vld [vmem:[%s5480_s10 + $0xc] sm:$0xf0] }
 0x143   : > { %1357 = vmatpush.bf16.msrb.mxu3 %v3012_v11  ;;  %v2949_v57 = vld [vmem:[%s5480_s10 + $0x10] sm:$0xf0]  ;;  %v2955_v59 = vld [vmem:[%s5480_s10 + $0x8] sm:$0xf]  ;;  %v3733_v61 = vld [vmem:[%s5480_s10 + $0x14] sm:$0xf0]  ;;  %v2948_v0 = vor.u32 %v3732_v53, %v2947_v1 }
 0x144   : > { %1370 = vmatpush.bf16.msra.mxu0 %v3016_v15  ;;  %v3731_v62 = vld [vmem:[%s5480_s10 + $0xc] sm:$0xf]  ;;  %v2957_v63 = vld [vmem:[%s5480_s10 + $0x18] sm:$0xf0]  ;;  %v2956_v3 = vor.u32 %v3733_v61, %v2955_v59  ;;  %v3980_v6 = vld [vmem:[%s5479_s9] ss:$0 sm:$0xff] }
 0x145   : > { %v2960_v4 = vor.u32 %v3731_v62, %v2957_v63  ;;  %v3315_v9 = vld [vmem:[%s5483_s13 + $0x1e0] sm:$0xf]  ;;  %v3832_v10 = vld [vmem:[%s5483_s13 + $0x1ec] sm:$0xf0] }
 0x146   : > { %1384 = vmatpush.bf16.msra.mxu1 %v3004_v23  ;;  %v3443_v11 = vld [vmem:[%s5483_s13 + $0x2e0] sm:$0xf]  ;;  %v3864_v12 = vld [vmem:[%s5483_s13 + $0x2ec] sm:$0xf0] }
 0x147   : > { %1358 = vmatpush.bf16.msrb.mxu3 %v2996_v21  ;;  %v3187_v13 = vld [vmem:[%s5483_s13 + $0xe0] sm:$0xf]  ;;  %v3800_v14 = vld [vmem:[%s5483_s13 + $0xec] sm:$0xf0]  ;;  %v3444_v18 = vor.u32 %v3864_v12, %v3443_v11 }
 0x148   : > { %1371 = vmatpush.bf16.msra.mxu0 %v3000_v22  ;;  %v3571_v29 = vld [vmem:[%s5483_s13 + $0x3e0] sm:$0xf]  ;;  %v3896_v46 = vld [vmem:[%s5483_s13 + $0x3ec] sm:$0xf0]  ;;  %v3188_v50 = vor.u32 %v3800_v14, %v3187_v13 }
 0x149   : > { %v3299_v19 = vld [vmem:[%s5483_s13 + $0x1c0] sm:$0xf]  ;;  %v3828_v20 = vld [vmem:[%s5483_s13 + $0x1cc] sm:$0xf0]  ;;  %v3572_v5 = vor.u32 %v3896_v46, %v3571_v29 }
 0x14a   : > { %1385 = vmatpush.bf16.msra.mxu1 %v2988_v33  ;;  %v3427_v21 = vld [vmem:[%s5483_s13 + $0x2c0] sm:$0xf]  ;;  %v3860_v34 = vld [vmem:[%s5483_s13 + $0x2cc] sm:$0xf0]  ;;  %v3300_v27 = vor.u32 %v3828_v20, %v3299_v19 }
 0x14b   : > { %1359 = vmatpush.bf16.msrb.mxu3 %v2980_v58  ;;  %v3171_v22 = vld [vmem:[%s5483_s13 + $0xc0] sm:$0xf]  ;;  %v3796_v23 = vld [vmem:[%s5483_s13 + $0xcc] sm:$0xf0]  ;;  %v3428_v42 = vor.u32 %v3860_v34, %v3427_v21 }
 0x14c   : > { %1372 = vmatpush.bf16.msra.mxu0 %v2984_v32  ;;  %v3555_v38 = vld [vmem:[%s5483_s13 + $0x3c0] sm:$0xf]  ;;  %v3892_v54 = vld [vmem:[%s5483_s13 + $0x3cc] sm:$0xf0]  ;;  %v3172_v32 = vor.u32 %v3796_v23, %v3171_v22 }
 0x14d   : > { %v3981_v26 = vld [vmem:[%s5474_s4] ss:$0 sm:$0xff]  ;;  %v3824_v28 = vld [vmem:[%s5483_s13 + $0x1ac] sm:$0xf0]  ;;  %v3556_v33 = vor.u32 %v3892_v54, %v3555_v38 }
 0x14e   : > { %v3283_v58 = vld [vmem:[%s5483_s13 + $0x1a0] sm:$0xf]  ;;  %v3856_v31 = vld [vmem:[%s5483_s13 + $0x2ac] sm:$0xf0] }
 0x14f   : > { %v3411_v30 = vld [vmem:[%s5483_s13 + $0x2a0] sm:$0xf]  ;;  %v3792_v36 = vld [vmem:[%s5483_s13 + $0xac] sm:$0xf0] }
 0x150   : > { %v3155_v35 = vld [vmem:[%s5483_s13 + $0xa0] sm:$0xf]  ;;  %v3788_v1 = vld [vmem:[%s5483_s13 + $0x8c] sm:$0xf0] }
 0x151   : > { %v3523_v53 = vld [vmem:[%s5483_s13 + $0x380] sm:$0xf]  ;;  %v3816_v59 = vld [vmem:[%s5483_s13 + $0x16c] sm:$0xf0] }
 0x152   : > { %v3848_v61 = vld [vmem:[%s5483_s13 + $0x26c] sm:$0xf0]  ;;  %v3363_v11 = vld [vmem:[%s5483_s13 + $0x240] sm:$0xf] }
 0x153   : > { %v3844_v12 = vld [vmem:[%s5483_s13 + $0x24c] sm:$0xf0]  ;;  %v3491_v46 = vld [vmem:[%s5483_s13 + $0x340] sm:$0xf] }
 0x154   : > { %v3780_v29 = vld [vmem:[%s5483_s13 + $0x4c] sm:$0xf0]  ;;  %v3219_v19 = vld [vmem:[%s5483_s13 + $0x120] sm:$0xf] }
 0x155   : > { %v3808_v20 = vld [vmem:[%s5483_s13 + $0x12c] sm:$0xf0]  ;;  %v3347_v21 = vld [vmem:[%s5483_s13 + $0x220] sm:$0xf] }
 0x156   : > { %v3840_v34 = vld [vmem:[%s5483_s13 + $0x22c] sm:$0xf0]  ;;  %v3091_v22 = vld [vmem:[%s5483_s13 + $0x20] sm:$0xf] }
 0x157   : > { %v3776_v23 = vld [vmem:[%s5483_s13 + $0x2c] sm:$0xf0]  ;;  %v3475_v38 = vld [vmem:[%s5483_s13 + $0x320] sm:$0xf] }
 0x158   : > { %v3872_v54 = vld [vmem:[%s5483_s13 + $0x32c] sm:$0xf0] }
 0x1aa   : > { %v1021_v44 = vpop.f32.mrf.mxu1 }
 0x1ab   : > { %v1022_v45 = vadd.f32 %v3979_v43, %v1021_v44  ;;  %v2965_v43 = vld [vmem:[%s5480_s10 + $0x30] sm:$0xf0]  ;;  %v2964_v44 = vor.u32 %v3736_v40, %v2963_v37  ;;  %v3539_v37 = vld [vmem:[%s5483_s13 + $0x3a0] sm:$0xf]  ;;  %v3284_v40 = vor.u32 %v3824_v28, %v3283_v58  ;;  %v3836_v28 = vld [vmem:[%s5483_s13 + $0x20c] sm:$0xf0] }
 0x1ac   : > { %v3331_v58 = vld [vmem:[%s5483_s13 + $0x200] sm:$0xf] }
 0x1ad   : > { %v1025_v49 = vmax.f32 %v1022_v45, 0.0  ;;  %v2971_v45 = vld [vmem:[%s5480_s10 + $0x28] sm:$0xf]  ;;  %1360 = vmatpush.bf16.msrb.mxu3 %v2964_v44  ;;  %v3820_v44 = vld [vmem:[%s5483_s13 + $0x18c] sm:$0xf0] }
 0x1af   : > { %v1026_v52 = vpack.c.bf16 %v1025_v49, %v1025_v49  ;;  %v2968_v49 = vor.u32 %v3734_v41, %v2965_v43  ;;  %v3412_v41 = vor.u32 %v3856_v31, %v3411_v30  ;;  %v3267_v43 = vld [vmem:[%s5483_s13 + $0x180] sm:$0xf]  ;;  %v3830_v30 = vld [vmem:[%s5483_s13 + $0x1e4] sm:$0xf]  ;;  %v3092_v31 = vor.u32 %v3776_v23, %v3091_v22 }
 0x1b0   : > { %v3846_v23 = vld [vmem:[%s5483_s13 + $0x264] sm:$0xf] }
 0x1b1   : > { %2908 = vmatmul.msk.bf16.vlgmr.msra.gmra.mxu2 %vm917_vm4, %v1026_v52  ;;  %v2973_v52 = vld [vmem:[%s5480_s10 + $0x38] sm:$0xf0]  ;;  %1373 = vmatpush.bf16.msra.mxu0 %v2968_v49 }
 0x1b2   : > { %v1023_v55 = vpop.f32.mrf.mxu1  ;;  %1393 = vmatpush.bf16.msra.mxu2 %v3072_v51  ;;  %v4466_v24 = vpop.f32.mrf.mxu0  ;;  %v2972_v51 = vor.u32 %v3737_v47, %v2971_v45  ;;  %1361 = vmatpush.bf16.msrb.mxu3 %v2948_v0  ;;  %v3395_v45 = vld [vmem:[%s5483_s13 + $0x280] sm:$0xf]  ;;  %v3852_v47 = vld [vmem:[%s5483_s13 + $0x28c] sm:$0xf0] }
 0x1b3   : > { %v2976_v55 = vor.u32 %v3735_v48, %v2973_v52  ;;  %v3156_v48 = vor.u32 %v3792_v36, %v3155_v35  ;;  %v993_v52 = vadd.f32 %v3981_v26, %v4466_v24  ;;  %v3251_v24 = vld [vmem:[%s5483_s13 + $0x160] sm:$0xf]  ;;  %v3348_v26 = vor.u32 %v3840_v34, %v3347_v21  ;;  %v3862_v35 = vld [vmem:[%s5483_s13 + $0x2e4] sm:$0xf]  ;;  %v3445_v36 = vld [vmem:[%s5483_s13 + $0x2f0] sm:$0xf0] }
 0x1b4   : > { %1386 = vmatpush.bf16.msra.mxu1 %v2972_v51  ;;  %v3139_v51 = vld [vmem:[%s5483_s13 + $0x80] sm:$0xf]  ;;  %v3541_v21 = vld [vmem:[%s5483_s13 + $0x3b0] sm:$0xf0]  ;;  %v3814_v34 = vld [vmem:[%s5483_s13 + $0x164] sm:$0xf] }
 0x1b5   : > { %v3140_v62 = vor.u32 %v3788_v1, %v3139_v51  ;;  %v3123_v0 = vld [vmem:[%s5483_s13 + $0x60] sm:$0xf]  ;;  %v3772_v51 = vld [vmem:[%s5483_s13 + $0xc] sm:$0xf0] }
 0x1b6   : > { %1394 = vmatpush.bf16.msra.mxu2 %v3056_v56  ;;  %v3730_v56 = vld [vmem:[%s5480_s10 + $0x4] sm:$0xf] }
 0x1b7   : > { %v2952_v2 = vor.u32 %v3730_v56, %v2949_v57  ;;  %v3268_v56 = vor.u32 %v3820_v44, %v3267_v43  ;;  %v3396_v57 = vor.u32 %v3852_v47, %v3395_v45  ;;  %v3826_v43 = vld [vmem:[%s5483_s13 + $0x1c4] sm:$0xf]  ;;  %v3301_v44 = vld [vmem:[%s5483_s13 + $0x1d0] sm:$0xf0] }
 0x1b8   : > { %1387 = vmatpush.bf16.msra.mxu1 %v2956_v3  ;;  %v3784_v3 = vld [vmem:[%s5483_s13 + $0x6c] sm:$0xf0]  ;;  %v3858_v45 = vld [vmem:[%s5483_s13 + $0x2c4] sm:$0xf]  ;;  %v3304_v47 = vor.u32 %v3826_v43, %v3301_v44  ;;  %v3509_v43 = vld [vmem:[%s5483_s13 + $0x370] sm:$0xf0] }
 0x1b9   : > { %1374 = vmatpush.bf16.msra.mxu0 %v2952_v2  ;;  %v1056_v2 = vpack.c.bf16 %v993_v52, %v993_v52  ;;  %v3124_v13 = vor.u32 %v3784_v3, %v3123_v0  ;;  %v3285_v0 = vld [vmem:[%s5483_s13 + $0x1b0] sm:$0xf0] }
 0x1ba   : > { %1395 = vmatpush.bf16.msra.mxu2 %v3040_v7  ;;  %v994_v60 = vpop.f32.mrf.mxu0 }
 0x1bb   : > { %v3379_v60 = vld [vmem:[%s5483_s13 + $0x260] sm:$0xf] }
 0x1be   : > { %1396 = vmatpush.bf16.msra.mxu2 %v3024_v17  ;;  %v3316_v17 = vor.u32 %v3832_v10, %v3315_v9  ;;  %v3235_v9 = vld [vmem:[%s5483_s13 + $0x140] sm:$0xf]  ;;  %v3812_v10 = vld [vmem:[%s5483_s13 + $0x14c] sm:$0xf0] }
 0x1c2   : > { %1397 = vmatpush.bf16.msra.mxu2 %v3008_v25 }
 0x1c6   : > { %1398 = vmatpush.bf16.msra.mxu2 %v2992_v39  ;;  %v3888_v39 = vld [vmem:[%s5483_s13 + $0x3ac] sm:$0xf0] }
 0x1c7   : > { %v3540_v49 = vor.u32 %v3888_v39, %v3539_v37  ;;  %v3332_v39 = vor.u32 %v3836_v28, %v3331_v58  ;;  %v3525_v58 = vld [vmem:[%s5483_s13 + $0x390] sm:$0xf0] }
 0x1ca   : > { %1399 = vmatpush.bf16.msra.mxu2 %v2976_v55  ;;  %v3884_v55 = vld [vmem:[%s5483_s13 + $0x38c] sm:$0xf0] }
 0x1cb   : > { %v3524_v63 = vor.u32 %v3884_v55, %v3523_v53  ;;  %v3459_v53 = vld [vmem:[%s5483_s13 + $0x300] sm:$0xf]  ;;  %v3868_v55 = vld [vmem:[%s5483_s13 + $0x30c] sm:$0xf0] }
 0x1ce   : > { %1400 = vmatpush.bf16.msra.mxu2 %v2960_v4  ;;  %v3507_v4 = vld [vmem:[%s5483_s13 + $0x360] sm:$0xf] }
 0x234   : > { %v1051_v7 = vpop.f32.mrf.mxu2 }
 0x235   : > { %v1052_v8 = vadd.f32 %v3980_v6, %v1051_v7  ;;  %v3880_v6 = vld [vmem:[%s5483_s13 + $0x36c] sm:$0xf0]  ;;  %v3252_v7 = vor.u32 %v3816_v59, %v3251_v24  ;;  %v3189_v24 = vld [vmem:[%s5483_s13 + $0xf0] sm:$0xf0]  ;;  %v3894_v59 = vld [vmem:[%s5483_s13 + $0x3e4] sm:$0xf] }
 0x236   : > { %v3508_v14 = vor.u32 %v3880_v6, %v3507_v4  ;;  %v3413_v4 = vld [vmem:[%s5483_s13 + $0x2b0] sm:$0xf0] }
 0x237   : > { %v1055_v15 = vmax.f32 %v1052_v8, 0.0  ;;  %v3380_v8 = vor.u32 %v3848_v61, %v3379_v60  ;;  %v3573_v60 = vld [vmem:[%s5483_s13 + $0x3f0] sm:$0xf0] }
 0x239   : > { %v1089_v16 = vpack.c.bf16 %v1055_v15, %v1055_v15  ;;  %v3107_v15 = vld [vmem:[%s5483_s13 + $0x40] sm:$0xf] }
 0x23b   : > { %2941 = vmatmul.msk.bf16.vlgmr.msra.gmra.mxu3 %vm1138_vm7, %v1089_v16  ;;  %2942 = vmatmul.msk.bf16.vlgmr.msrb.gmra.mxu0 %vm1138_vm7, %v1089_v16 }
 0x23c   : > { %2943 = vmatmul.msk.bf16.vlgmr.msrb.gmra.mxu1 %vm1138_vm7, %v1089_v16  ;;  %2944 = vmatmul.msk.bf16.vlgmr.msrb.gmra.mxu2 %vm1138_vm7, %v1089_v16  ;;  %v1053_v25 = vpop.f32.mrf.mxu2  ;;  %v3876_v16 = vld [vmem:[%s5483_s13 + $0x34c] sm:$0xf0] }
 0x23d   : > { %2219 = vmatpush.bf16.msrb.mxu0 %v3316_v17  ;;  %2232 = vmatpush.bf16.msrb.mxu1 %v3444_v18  ;;  %v3236_v17 = vor.u32 %v3812_v10, %v3235_v9  ;;  %v3364_v18 = vor.u32 %v3844_v12, %v3363_v11  ;;  %v3220_v25 = vor.u32 %v3808_v20, %v3219_v19  ;;  %v3890_v9 = vld [vmem:[%s5483_s13 + $0x3c4] sm:$0xf]  ;;  %v3557_v11 = vld [vmem:[%s5483_s13 + $0x3d0] sm:$0xf0] }
 0x23e   : > { %2206 = vmatpush.bf16.msra.mxu3 %v3188_v50  ;;  %2245 = vmatpush.bf16.msrb.mxu2 %v3572_v5  ;;  %v3108_v50 = vor.u32 %v3780_v29, %v3107_v15  ;;  %v3492_v5 = vor.u32 %v3876_v16, %v3491_v46  ;;  %v3560_v12 = vor.u32 %v3890_v9, %v3557_v11  ;;  %v3850_v15 = vld [vmem:[%s5483_s13 + $0x284] sm:$0xf]  ;;  %v3397_v46 = vld [vmem:[%s5483_s13 + $0x290] sm:$0xf0] }
 0x23f   : > { %v3400_v16 = vor.u32 %v3850_v15, %v3397_v46  ;;  %v3886_v19 = vld [vmem:[%s5483_s13 + $0x3a4] sm:$0xf] }
 0x240   : > { %v3770_v9 = vld [vmem:[%s5483_s13 + $0x4] sm:$0xf] }
 0x241   : > { %2220 = vmatpush.bf16.msrb.mxu0 %v3300_v27  ;;  %2233 = vmatpush.bf16.msrb.mxu1 %v3428_v42  ;;  %v3203_v27 = vld [vmem:[%s5483_s13 + $0x100] sm:$0xf]  ;;  %v3804_v42 = vld [vmem:[%s5483_s13 + $0x10c] sm:$0xf0] }
 0x242   : > { %2207 = vmatpush.bf16.msra.mxu3 %v3172_v32  ;;  %2246 = vmatpush.bf16.msrb.mxu2 %v3556_v33  ;;  %v3476_v32 = vor.u32 %v3872_v54, %v3475_v38  ;;  %v3317_v33 = vld [vmem:[%s5483_s13 + $0x1f0] sm:$0xf0]  ;;  %v3204_v37 = vor.u32 %v3804_v42, %v3203_v27  ;;  %v3882_v27 = vld [vmem:[%s5483_s13 + $0x384] sm:$0xf] }
 0x243   : > { %v3381_v38 = vld [vmem:[%s5483_s13 + $0x270] sm:$0xf0]  ;;  %v3528_v28 = vor.u32 %v3882_v27, %v3525_v58  ;;  %v3865_v58 = vld [vmem:[%s5483_s13 + $0x2f4] sm:$0xf0] }
 0x244   : > { %v3384_v54 = vor.u32 %v3846_v23, %v3381_v38 }
 0x245   : > { %2221 = vmatpush.bf16.msrb.mxu0 %v3284_v40  ;;  %2234 = vmatpush.bf16.msrb.mxu1 %v3412_v41  ;;  %v3320_v40 = vor.u32 %v3830_v30, %v3317_v33  ;;  %v3448_v41 = vor.u32 %v3862_v35, %v3445_v36  ;;  %v3810_v30 = vld [vmem:[%s5483_s13 + $0x144] sm:$0xf]  ;;  %v3365_v35 = vld [vmem:[%s5483_s13 + $0x250] sm:$0xf0] }
 0x246   : > { %2208 = vmatpush.bf16.msra.mxu3 %v3156_v48  ;;  %2247 = vmatpush.bf16.msrb.mxu2 %v3540_v49  ;;  %v3429_v48 = vld [vmem:[%s5483_s13 + $0x2d0] sm:$0xf0]  ;;  %v3075_v49 = vld [vmem:[%s5483_s13] sm:$0xf] }
 0x247   : > { %v3432_v52 = vor.u32 %v3858_v45, %v3429_v48  ;;  %v3076_v1 = vor.u32 %v3772_v51, %v3075_v49  ;;  %v3806_v45 = vld [vmem:[%s5483_s13 + $0x124] sm:$0xf]  ;;  %v3349_v51 = vld [vmem:[%s5483_s13 + $0x230] sm:$0xf0] }
 0x248   : > { %v3838_v49 = vld [vmem:[%s5483_s13 + $0x224] sm:$0xf] }
 0x249   : > { %2222 = vmatpush.bf16.msrb.mxu0 %v3268_v56  ;;  %2235 = vmatpush.bf16.msrb.mxu1 %v3396_v57  ;;  %v3798_v56 = vld [vmem:[%s5483_s13 + $0xe4] sm:$0xf]  ;;  %v3460_v57 = vor.u32 %v3868_v55, %v3459_v53  ;;  %v3109_v53 = vld [vmem:[%s5483_s13 + $0x50] sm:$0xf0] }
 0x24a   : > { %2209 = vmatpush.bf16.msra.mxu3 %v3140_v62  ;;  %2248 = vmatpush.bf16.msrb.mxu2 %v3524_v63  ;;  %v3192_v61 = vor.u32 %v3798_v56, %v3189_v24  ;;  %v3576_v62 = vor.u32 %v3894_v59, %v3573_v60  ;;  %v3822_v63 = vld [vmem:[%s5483_s13 + $0x1a4] sm:$0xf]  ;;  %v3205_v60 = vld [vmem:[%s5483_s13 + $0x110] sm:$0xf0] }
 0x24b   : > { %1362 = vmatmul.bf16.vlgmr.msrb.gmra.mxu3 %v1056_v2  ;;  %1375 = vmatmul.bf16.vlgmr.msra.gmra.mxu0 %v1056_v2  ;;  %v3288_v3 = vor.u32 %v3822_v63, %v3285_v0  ;;  %v3874_v55 = vld [vmem:[%s5483_s13 + $0x344] sm:$0xf]  ;;  %v3333_v63 = vld [vmem:[%s5483_s13 + $0x210] sm:$0xf0] }
 0x24c   : > { %1388 = vmatmul.bf16.vlgmr.msra.gmra.mxu1 %v1056_v2  ;;  %1401 = vmatmul.bf16.vlgmr.msra.gmra.mxu2 %v1056_v2  ;;  %v3854_v2 = vld [vmem:[%s5483_s13 + $0x2a4] sm:$0xf] }
 0x24d   : > { %2223 = vmatpush.bf16.msrb.mxu0 %v3252_v7  ;;  %2236 = vmatpush.bf16.msrb.mxu1 %v3380_v8  ;;  %v3416_v6 = vor.u32 %v3854_v2, %v3413_v4  ;;  %v3794_v7 = vld [vmem:[%s5483_s13 + $0xc4] sm:$0xf]  ;;  %v3173_v8 = vld [vmem:[%s5483_s13 + $0xd0] sm:$0xf0] }
 0x24e   : > { %2210 = vmatpush.bf16.msra.mxu3 %v3124_v13  ;;  %2249 = vmatpush.bf16.msrb.mxu2 %v3508_v14  ;;  %v3176_v10 = vor.u32 %v3794_v7, %v3173_v8  ;;  %v3818_v13 = vld [vmem:[%s5483_s13 + $0x184] sm:$0xf]  ;;  %v3269_v14 = vld [vmem:[%s5483_s13 + $0x190] sm:$0xf0] }
 0x24f   : > { %v3272_v29 = vor.u32 %v3818_v13, %v3269_v14  ;;  %v3802_v59 = vld [vmem:[%s5483_s13 + $0x104] sm:$0xf]  ;;  %v3477_v7 = vld [vmem:[%s5483_s13 + $0x330] sm:$0xf0] }
 0x250   : > { %v3774_v2 = vld [vmem:[%s5483_s13 + $0x24] sm:$0xf]  ;;  %v3461_v13 = vld [vmem:[%s5483_s13 + $0x310] sm:$0xf0] }
 0x251   : > { %2224 = vmatpush.bf16.msrb.mxu0 %v3236_v17  ;;  %2237 = vmatpush.bf16.msrb.mxu1 %v3364_v18  ;;  %v3790_v17 = vld [vmem:[%s5483_s13 + $0xa4] sm:$0xf]  ;;  %v3157_v18 = vld [vmem:[%s5483_s13 + $0xb0] sm:$0xf0] }
 0x252   : > { %2211 = vmatpush.bf16.msra.mxu3 %v3108_v50  ;;  %2250 = vmatpush.bf16.msrb.mxu2 %v3492_v5  ;;  %v3160_v20 = vor.u32 %v3790_v17, %v3157_v18  ;;  %v3253_v50 = vld [vmem:[%s5483_s13 + $0x170] sm:$0xf0]  ;;  %v3544_v5 = vor.u32 %v3886_v19, %v3541_v21  ;;  %v3870_v4 = vld [vmem:[%s5483_s13 + $0x324] sm:$0xf]  ;;  %v1406_v19 = vld [vmem:[%s5482_s12] sm:$0xf] }
 0x253   : > { %v3256_v22 = vor.u32 %v3814_v34, %v3253_v50  ;;  %v3480_v8 = vor.u32 %v3870_v4, %v3477_v7  ;;  %v1409_v34 = vperm.slane %v1406_v19, 1  ;;  %v3179_v7 = vld [vmem:[%s5483_s13 + $0xc8] sm:$0xf] }
 0x255   : > { %2225 = vmatpush.bf16.msrb.mxu0 %v3220_v25  ;;  %2238 = vmatpush.bf16.msrb.mxu1 %v3348_v26  ;;  %v3786_v25 = vld [vmem:[%s5483_s13 + $0x84] sm:$0xf]  ;;  %v3141_v26 = vld [vmem:[%s5483_s13 + $0x90] sm:$0xf0] }
 0x256   : > { %2212 = vmatpush.bf16.msra.mxu3 %v3092_v31  ;;  %2251 = vmatpush.bf16.msrb.mxu2 %v3476_v32  ;;  %v3144_v42 = vor.u32 %v3786_v25, %v3141_v26  ;;  %v3237_v31 = vld [vmem:[%s5483_s13 + $0x150] sm:$0xf0]  ;;  %v3842_v32 = vld [vmem:[%s5483_s13 + $0x244] sm:$0xf]  ;;  %v3323_v25 = vld [vmem:[%s5483_s13 + $0x1e8] sm:$0xf] }
 0x257   : > { %v3240_v33 = vor.u32 %v3810_v30, %v3237_v31  ;;  %v3368_v36 = vor.u32 %v3842_v32, %v3365_v35  ;;  %v3833_v26 = vld [vmem:[%s5483_s13 + $0x1f4] sm:$0xf0]  ;;  %v1408_v30 = vperm.slane %v1406_v19, 0 }
 0x258   : > { %v3324_v35 = vor.u32 %v3833_v26, %v3323_v25  ;;  %v3387_v25 = vld [vmem:[%s5483_s13 + $0x268] sm:$0xf]  ;;  %v3849_v26 = vld [vmem:[%s5483_s13 + $0x274] sm:$0xf0] }
 0x259   : > { %2226 = vmatpush.bf16.msrb.mxu0 %v3204_v37  ;;  %2239 = vmatpush.bf16.msrb.mxu1 %v3332_v39  ;;  %v3782_v37 = vld [vmem:[%s5483_s13 + $0x64] sm:$0xf]  ;;  %v3125_v39 = vld [vmem:[%s5483_s13 + $0x70] sm:$0xf0] }
 0x25a   : > { %2213 = vmatpush.bf16.msra.mxu3 %v3076_v1  ;;  %2252 = vmatpush.bf16.msrb.mxu2 %v3460_v57  ;;  %v3778_v1 = vld [vmem:[%s5483_s13 + $0x44] sm:$0xf]  ;;  %v3493_v57 = vld [vmem:[%s5483_s13 + $0x350] sm:$0xf0] }
 0x25b   : > { %v3112_v56 = vor.u32 %v3778_v1, %v3109_v53  ;;  %v3496_v24 = vor.u32 %v3874_v55, %v3493_v57  ;;  %v3195_v1 = vld [vmem:[%s5483_s13 + $0xe8] sm:$0xf]  ;;  %v3801_v53 = vld [vmem:[%s5483_s13 + $0xf4] sm:$0xf0] }
 0x25c   : > { %v3579_v57 = vld [vmem:[%s5483_s13 + $0x3e8] sm:$0xf] }
 0x25d   : > { %2271 = vmatpush.bf16.msra.mxu0 %v3320_v40  ;;  %2284 = vmatpush.bf16.msra.mxu1 %v3448_v41  ;;  %v3878_v40 = vld [vmem:[%s5483_s13 + $0x364] sm:$0xf]  ;;  %v3128_v41 = vor.u32 %v3782_v37, %v3125_v39 }
 0x25e   : > { %2258 = vmatpush.bf16.msrb.mxu3 %v3192_v61  ;;  %2297 = vmatpush.bf16.msra.mxu2 %v3576_v62  ;;  %v3512_v44 = vor.u32 %v3878_v40, %v3509_v43  ;;  %v3834_v61 = vld [vmem:[%s5483_s13 + $0x204] sm:$0xf]  ;;  %v3208_v62 = vor.u32 %v3802_v59, %v3205_v60  ;;  %v3829_v43 = vld [vmem:[%s5483_s13 + $0x1d4] sm:$0xf0] }
 0x25f   : > { %v3336_v0 = vor.u32 %v3834_v61, %v3333_v63  ;;  %v3291_v61 = vld [vmem:[%s5483_s13 + $0x1a8] sm:$0xf] }
 0x261   : > { %2272 = vmatpush.bf16.msra.mxu0 %v3304_v47  ;;  %2285 = vmatpush.bf16.msra.mxu1 %v3432_v52  ;;  %v3221_v47 = vld [vmem:[%s5483_s13 + $0x130] sm:$0xf0]  ;;  %v3352_v52 = vor.u32 %v3838_v49, %v3349_v51  ;;  %v3861_v49 = vld [vmem:[%s5483_s13 + $0x2d4] sm:$0xf0] }
 0x262   : > { %2259 = vmatpush.bf16.msrb.mxu3 %v3176_v10  ;;  %2298 = vmatpush.bf16.msra.mxu2 %v3560_v12  ;;  %v3224_v48 = vor.u32 %v3806_v45, %v3221_v47  ;;  %v3077_v10 = vld [vmem:[%s5483_s13 + $0x10] sm:$0xf0]  ;;  %v3866_v12 = vld [vmem:[%s5483_s13 + $0x304] sm:$0xf] }
 0x263   : > { %v3080_v11 = vor.u32 %v3770_v9, %v3077_v10  ;;  %v3464_v14 = vor.u32 %v3866_v12, %v3461_v13  ;;  %v3563_v12 = vld [vmem:[%s5483_s13 + $0x3c8] sm:$0xf]  ;;  %v3893_v13 = vld [vmem:[%s5483_s13 + $0x3d4] sm:$0xf0] }
 0x265   : > { %2273 = vmatpush.bf16.msra.mxu0 %v3288_v3  ;;  %2286 = vmatpush.bf16.msra.mxu1 %v3416_v6  ;;  %v3093_v3 = vld [vmem:[%s5483_s13 + $0x30] sm:$0xf0] }
 0x266   : > { %2260 = vmatpush.bf16.msrb.mxu3 %v3160_v20  ;;  %2299 = vmatpush.bf16.msra.mxu2 %v3544_v5  ;;  %v3096_v6 = vor.u32 %v3774_v2, %v3093_v3  ;;  %v1410_v5 = vperm.slane %v1406_v19, 2  ;;  %v3419_v2 = vld [vmem:[%s5483_s13 + $0x2a8] sm:$0xf]  ;;  %v3857_v3 = vld [vmem:[%s5483_s13 + $0x2b4] sm:$0xf0] }
 0x269   : > { %2274 = vmatpush.bf16.msra.mxu0 %v3272_v29  ;;  %2287 = vmatpush.bf16.msra.mxu1 %v3400_v16 }
 0x26a   : > { %2261 = vmatpush.bf16.msrb.mxu3 %v3144_v42  ;;  %2300 = vmatpush.bf16.msra.mxu2 %v3528_v28  ;;  %v3451_v42 = vld [vmem:[%s5483_s13 + $0x2e8] sm:$0xf] }
 0x26b   : > { %v3452_v40 = vor.u32 %v3865_v58, %v3451_v42  ;;  %v3147_v42 = vld [vmem:[%s5483_s13 + $0x88] sm:$0xf]  ;;  %v3789_v58 = vld [vmem:[%s5483_s13 + $0x94] sm:$0xf0] }
 0x26d   : > { %2275 = vmatpush.bf16.msra.mxu0 %v3256_v22  ;;  %2288 = vmatpush.bf16.msra.mxu1 %v3384_v54 }
 0x26e   : > { %2262 = vmatpush.bf16.msrb.mxu3 %v3128_v41  ;;  %2301 = vmatpush.bf16.msra.mxu2 %v3512_v44  ;;  %v3307_v41 = vld [vmem:[%s5483_s13 + $0x1c8] sm:$0xf] }
 0x271   : > { %2276 = vmatpush.bf16.msra.mxu0 %v3240_v33  ;;  %2289 = vmatpush.bf16.msra.mxu1 %v3368_v36  ;;  %v1411_v33 = vperm.slane %v1406_v19, 3  ;;  %v3564_v19 = vor.u32 %v3893_v13, %v3563_v12  ;;  %v3453_v13 = vld [vmem:[%s5483_s13 + $0x2f8] sm:$0xf0] }
 0x272   : > { %2263 = vmatpush.bf16.msrb.mxu3 %v3112_v56  ;;  %2302 = vmatpush.bf16.msra.mxu2 %v3496_v24  ;;  %v3308_v56 = vor.u32 %v3829_v43, %v3307_v41  ;;  %v3897_v24 = vld [vmem:[%s5483_s13 + $0x3f4] sm:$0xf0]  ;;  %v3131_v43 = vld [vmem:[%s5483_s13 + $0x68] sm:$0xf] }
 0x275   : > { %2277 = vmatpush.bf16.msra.mxu0 %v3224_v48  ;;  %2290 = vmatpush.bf16.msra.mxu1 %v3352_v52  ;;  %v3435_v48 = vld [vmem:[%s5483_s13 + $0x2c8] sm:$0xf] }
 0x276   : > { %2264 = vmatpush.bf16.msrb.mxu3 %v3096_v6  ;;  %2303 = vmatpush.bf16.msra.mxu2 %v3480_v8  ;;  %v3436_v60 = vor.u32 %v3861_v49, %v3435_v48  ;;  %v3580_v6 = vor.u32 %v3897_v24, %v3579_v57  ;;  %v3797_v8 = vld [vmem:[%s5483_s13 + $0xd4] sm:$0xf0]  ;;  %v3515_v48 = vld [vmem:[%s5483_s13 + $0x368] sm:$0xf] }
 0x277   : > { %v3881_v49 = vld [vmem:[%s5483_s13 + $0x374] sm:$0xf0]  ;;  %v3115_v24 = vld [vmem:[%s5483_s13 + $0x48] sm:$0xf] }
 0x278   : > { %v3516_v57 = vor.u32 %v3881_v49, %v3515_v48  ;;  %v3891_v48 = vld [vmem:[%s5483_s13 + $0x3cc] sm:$0xf]  ;;  %v3565_v49 = vld [vmem:[%s5483_s13 + $0x3d8] sm:$0xf0] }
 0x279   : > { %2278 = vmatpush.bf16.msra.mxu0 %v3208_v62  ;;  %2291 = vmatpush.bf16.msra.mxu1 %v3336_v0  ;;  %v3825_v62 = vld [vmem:[%s5483_s13 + $0x1b4] sm:$0xf0]  ;;  %v3196_v0 = vor.u32 %v3801_v53, %v3195_v1 }
 0x27a   : > { %2265 = vmatpush.bf16.msrb.mxu3 %v3080_v11  ;;  %2304 = vmatpush.bf16.msra.mxu2 %v3464_v14  ;;  %v3292_v11 = vor.u32 %v3825_v62, %v3291_v61  ;;  %v3809_v1 = vld [vmem:[%s5483_s13 + $0x134] sm:$0xf0]  ;;  %v3499_v61 = vld [vmem:[%s5483_s13 + $0x348] sm:$0xf] }
 0x27b   : > { %v3877_v62 = vld [vmem:[%s5483_s13 + $0x354] sm:$0xf0] }
 0x27c   : > { %v3500_v12 = vor.u32 %v3877_v62, %v3499_v61  ;;  %v3887_v61 = vld [vmem:[%s5483_s13 + $0x3ac] sm:$0xf]  ;;  %v3549_v62 = vld [vmem:[%s5483_s13 + $0x3b8] sm:$0xf0] }
 0x2b8   : > { %v1164_v15 = vpop.f32.mrf.mxu0 }
 0x2b9   : > { %v1177_v29 = vpop.f32.mrf.mxu1 }
 0x2be   : > { %v1151_v46 = vpop.f32.mrf.mxu3 }
 0x2bf   : > { %v1190_v16 = vpop.f32.mrf.mxu2 }
 0x2c0   : > { %v1166_v17 = vpop.f32.mrf.mxu0 }
 0x2c1   : > { %v1179_v18 = vpop.f32.mrf.mxu1  ;;  %v3403_v17 = vld [vmem:[%s5483_s13 + $0x288] sm:$0xf] }
 0x2c2   : > { %v3853_v18 = vld [vmem:[%s5483_s13 + $0x294] sm:$0xf0] }
 0x2c6   : > { %v1153_v20 = vpop.f32.mrf.mxu3 }
 0x2c7   : > { %v1192_v21 = vpop.f32.mrf.mxu2  ;;  %v3163_v20 = vld [vmem:[%s5483_s13 + $0xa8] sm:$0xf] }
 0x2c8   : > { %v1376_v50 = vpop.f32.mrf.mxu0  ;;  %v3793_v21 = vld [vmem:[%s5483_s13 + $0xb4] sm:$0xf0] }
 0x2c9   : > { %v1377_v22 = vadd.f32 %v1376_v50, %v1164_v15  ;;  %v1389_v23 = vpop.f32.mrf.mxu1  ;;  %v3420_v15 = vor.u32 %v3857_v3, %v3419_v2  ;;  %v3547_v50 = vld [vmem:[%s5483_s13 + $0x3a8] sm:$0xf]  ;;  %v3805_v2 = vld [vmem:[%s5483_s13 + $0x114] sm:$0xf0] }
 0x2ca   : > { %v1390_v38 = vadd.f32 %v1389_v23, %v1177_v29  ;;  %v3275_v29 = vld [vmem:[%s5483_s13 + $0x188] sm:$0xf] }
 0x2cb   : > { %v1417_v54 = vadd.f32 %v1409_v34, %v1377_v22  ;;  %v3404_v22 = vor.u32 %v3853_v18, %v3403_v17  ;;  %v3259_v23 = vld [vmem:[%s5483_s13 + $0x168] sm:$0xf] }
 0x2cc   : > { %v1418_v27 = vadd.f32 %v1410_v5, %v1390_v38  ;;  %v3889_v5 = vld [vmem:[%s5483_s13 + $0x3b4] sm:$0xf0]  ;;  %v3339_v3 = vld [vmem:[%s5483_s13 + $0x208] sm:$0xf] }
 0x2cd   : > { %v1421_v28 = vmax.f32 %v1417_v54, 0.0  ;;  %v3817_v38 = vld [vmem:[%s5483_s13 + $0x174] sm:$0xf0]  ;;  %v3164_v54 = vor.u32 %v3793_v21, %v3163_v20 }
 0x2ce   : > { %v1422_v31 = vmax.f32 %v1418_v27, 0.0  ;;  %v1363_v32 = vpop.f32.mrf.mxu3  ;;  %v3548_v27 = vor.u32 %v3889_v5, %v3547_v50  ;;  %v3859_v50 = vld [vmem:[%s5483_s13 + $0x2cc] sm:$0xf]  ;;  %v3437_v5 = vld [vmem:[%s5483_s13 + $0x2d8] sm:$0xf0] }
 0x2cf   : > { %v4950_v36 = vpack.c.bf16 %v1421_v28, %v1421_v28  ;;  %v1364_v37 = vadd.f32 %v1363_v32, %v1151_v46  ;;  %v1402_v39 = vpop.f32.mrf.mxu2  ;;  %v3821_v46 = vld [vmem:[%s5483_s13 + $0x194] sm:$0xf0]  ;;  %v3260_v28 = vor.u32 %v3817_v38, %v3259_v23  ;;  %v3388_v32 = vor.u32 %v3849_v26, %v3387_v25  ;;  %v3083_v23 = vld [vmem:[%s5483_s13 + $0x8] sm:$0xf]  ;;  %v3799_v26 = vld [vmem:[%s5483_s13 + $0xec] sm:$0xf] }
 0x2d0   : > { %v4958_v44 = vpack.c.bf16 %v1422_v31, %v1422_v31  ;;  %v1403_v45 = vadd.f32 %v1402_v39, %v1190_v16  ;;  %v1378_v47 = vpop.f32.mrf.mxu0  ;;  %v3180_v16 = vor.u32 %v3797_v8, %v3179_v7  ;;  %v3276_v34 = vor.u32 %v3821_v46, %v3275_v29  ;;  %v3885_v31 = vld [vmem:[%s5483_s13 + $0x394] sm:$0xf0]  ;;  %v3371_v39 = vld [vmem:[%s5483_s13 + $0x248] sm:$0xf]  ;;  %v3831_v8 = vld [vmem:[%s5483_s13 + $0x1ec] sm:$0xf] }
 0x2d1   : > { %v1416_v51 = vadd.f32 %v1408_v30, %v1364_v37  ;;  %v1391_v52 = vpop.f32.mrf.mxu1  ;;  %2227 = vmatmul.bf16.vlgmr.msrb.gmra.mxu0 %v4950_v36  ;;  %v3531_v30 = vld [vmem:[%s5483_s13 + $0x388] sm:$0xf]  ;;  %v3148_v37 = vor.u32 %v3789_v58, %v3147_v42  ;;  %v3773_v38 = vld [vmem:[%s5483_s13 + $0x14] sm:$0xf0]  ;;  %v3895_v58 = vld [vmem:[%s5483_s13 + $0x3ec] sm:$0xf] }
 0x2d2   : > { %v1419_v55 = vadd.f32 %v1411_v33, %v1403_v45  ;;  %2240 = vmatmul.bf16.vlgmr.msrb.gmra.mxu1 %v4958_v44  ;;  %2323 = vmatpush.bf16.msrb.mxu0 %v3324_v35  ;;  %v3243_v33 = vld [vmem:[%s5483_s13 + $0x148] sm:$0xf]  ;;  %v3813_v35 = vld [vmem:[%s5483_s13 + $0x154] sm:$0xf0]  ;;  %v3532_v41 = vor.u32 %v3885_v31, %v3531_v30  ;;  %v3440_v30 = vor.u32 %v3859_v50, %v3437_v5  ;;  %v3879_v50 = vld [vmem:[%s5483_s13 + $0x36c] sm:$0xf] }
 0x2d3   : > { %v1420_v59 = vmax.f32 %v1416_v51, 0.0  ;;  %2336 = vmatpush.bf16.msrb.mxu1 %v3452_v40  ;;  %v3845_v40 = vld [vmem:[%s5483_s13 + $0x254] sm:$0xf0]  ;;  %v3244_v47 = vor.u32 %v3813_v35, %v3243_v33  ;;  %v3227_v52 = vld [vmem:[%s5483_s13 + $0x128] sm:$0xf]  ;;  %v3084_v31 = vor.u32 %v3773_v38, %v3083_v23 }
 0x2d4   : > { %v1423_v63 = vmax.f32 %v1419_v55, 0.0  ;;  %v3785_v45 = vld [vmem:[%s5483_s13 + $0x74] sm:$0xf0]  ;;  %v3372_v51 = vor.u32 %v3845_v40, %v3371_v39  ;;  %v3355_v55 = vld [vmem:[%s5483_s13 + $0x228] sm:$0xf] }
 0x2d5   : > { %v4992_v4 = vpack.c.bf16 %v1420_v59, %v1420_v59  ;;  %v3132_v53 = vor.u32 %v3785_v45, %v3131_v43  ;;  %v3781_v59 = vld [vmem:[%s5483_s13 + $0x54] sm:$0xf0]  ;;  %v3483_v46 = vld [vmem:[%s5483_s13 + $0x328] sm:$0xf]  ;;  %v3293_v33 = vld [vmem:[%s5483_s13 + $0x1b8] sm:$0xf0] }
 0x2d6   : > { %v5000_v9 = vpack.c.bf16 %v1423_v63, %v1423_v63  ;;  %2324 = vmatpush.bf16.msrb.mxu0 %v3308_v56  ;;  %v1365_v10 = vpop.f32.mrf.mxu3  ;;  %v3841_v56 = vld [vmem:[%s5483_s13 + $0x234] sm:$0xf0]  ;;  %v3211_v63 = vld [vmem:[%s5483_s13 + $0x108] sm:$0xf]  ;;  %v3116_v7 = vor.u32 %v3781_v59, %v3115_v24  ;;  %v3855_v39 = vld [vmem:[%s5483_s13 + $0x2ac] sm:$0xf] }
 0x2d7   : > { %2337 = vmatpush.bf16.msrb.mxu1 %v3436_v60  ;;  %v1404_v14 = vpop.f32.mrf.mxu2  ;;  %2214 = vmatmul.bf16.vlgmr.msra.gmra.mxu3 %v4992_v4  ;;  %v3228_v60 = vor.u32 %v3809_v1, %v3227_v52  ;;  %v3325_v10 = vld [vmem:[%s5483_s13 + $0x1f8] sm:$0xf0]  ;;  %v3212_v29 = vor.u32 %v3805_v2, %v3211_v63  ;;  %v3869_v25 = vld [vmem:[%s5483_s13 + $0x314] sm:$0xf0]  ;;  %v3795_v43 = vld [vmem:[%s5483_s13 + $0xcc] sm:$0xf] }
 0x2d8   : > { %2253 = vmatmul.bf16.vlgmr.msrb.gmra.mxu2 %v5000_v9  ;;  %2310 = vmatpush.bf16.msra.mxu3 %v3196_v0  ;;  %v3356_v0 = vor.u32 %v3841_v56, %v3355_v55  ;;  %v3099_v14 = vld [vmem:[%s5483_s13 + $0x28] sm:$0xf]  ;;  %v3328_v18 = vor.u32 %v3831_v8, %v3325_v10  ;;  %v3421_v40 = vld [vmem:[%s5483_s13 + $0x2b8] sm:$0xf0]  ;;  %v3819_v52 = vld [vmem:[%s5483_s13 + $0x18c] sm:$0xf]  ;;  %v3552_v8 = vor.u32 %v3887_v61, %v3549_v62 }
 0x2d9   : > { %2349 = vmatpush.bf16.msrb.mxu2 %v3580_v6  ;;  %v3837_v6 = vld [vmem:[%s5483_s13 + $0x214] sm:$0xf0]  ;;  %v3181_v45 = vld [vmem:[%s5483_s13 + $0xd8] sm:$0xf0]  ;;  %v3851_v55 = vld [vmem:[%s5483_s13 + $0x28c] sm:$0xf] }
 0x2da   : > { %2325 = vmatpush.bf16.msrb.mxu0 %v3292_v11  ;;  %v3863_v11 = vld [vmem:[%s5483_s13 + $0x2ec] sm:$0xf]  ;;  %v3340_v17 = vor.u32 %v3837_v6, %v3339_v3  ;;  %v3277_v1 = vld [vmem:[%s5483_s13 + $0x198] sm:$0xf0]  ;;  %v3904_v61 = vld [vmem:[%s5485_s15 + $0x30] sm:$0xff] }
 0x2db   : > { %2338 = vmatpush.bf16.msrb.mxu1 %v3420_v15  ;;  %v3777_v15 = vld [vmem:[%s5483_s13 + $0x34] sm:$0xf0]  ;;  %v3456_v20 = vor.u32 %v3863_v11, %v3453_v13  ;;  %v3405_v56 = vld [vmem:[%s5483_s13 + $0x298] sm:$0xf0]  ;;  %v3791_v24 = vld [vmem:[%s5483_s13 + $0xac] sm:$0xf] }
 0x2dc   : > { %2311 = vmatpush.bf16.msra.mxu3 %v3180_v16  ;;  %v3873_v16 = vld [vmem:[%s5483_s13 + $0x334] sm:$0xf0]  ;;  %v3100_v21 = vor.u32 %v3777_v15, %v3099_v14  ;;  %v3165_v59 = vld [vmem:[%s5483_s13 + $0xb8] sm:$0xf0]  ;;  %v3408_v63 = vor.u32 %v3851_v55, %v3405_v56  ;;  %v3847_v6 = vld [vmem:[%s5483_s13 + $0x26c] sm:$0xf] }
 0x2dd   : > { %2350 = vmatpush.bf16.msrb.mxu2 %v3564_v19  ;;  %v3827_v19 = vld [vmem:[%s5483_s13 + $0x1cc] sm:$0xf]  ;;  %v3261_v2 = vld [vmem:[%s5483_s13 + $0x178] sm:$0xf0]  ;;  %v3168_v3 = vor.u32 %v3791_v24, %v3165_v59 }
 0x2de   : > { %2326 = vmatpush.bf16.msrb.mxu0 %v3276_v34  ;;  %v3309_v34 = vld [vmem:[%s5483_s13 + $0x1d8] sm:$0xf0]  ;;  %v3787_v10 = vld [vmem:[%s5483_s13 + $0x8c] sm:$0xf] }
 0x2df   : > { %2339 = vmatpush.bf16.msrb.mxu1 %v3404_v22  ;;  %v3484_v22 = vor.u32 %v3873_v16, %v3483_v46  ;;  %v3312_v42 = vor.u32 %v3827_v19, %v3309_v34  ;;  %v3149_v11 = vld [vmem:[%s5483_s13 + $0x98] sm:$0xf0]  ;;  %v3883_v13 = vld [vmem:[%s5483_s13 + $0x38c] sm:$0xf] }
 0x2e0   : > { %2312 = vmatpush.bf16.msra.mxu3 %v3164_v54  ;;  %v3467_v54 = vld [vmem:[%s5483_s13 + $0x308] sm:$0xf]  ;;  %v3533_v14 = vld [vmem:[%s5483_s13 + $0x398] sm:$0xf0]  ;;  %v3152_v16 = vor.u32 %v3787_v10, %v3149_v11  ;;  %v3807_v23 = vld [vmem:[%s5483_s13 + $0x12c] sm:$0xf] }
 0x2e1   : > { %2351 = vmatpush.bf16.msrb.mxu2 %v3548_v27  ;;  %2279 = vmatmul.bf16.vlgmr.msra.gmra.mxu0 %v4950_v36  ;;  %v3197_v27 = vld [vmem:[%s5483_s13 + $0xf8] sm:$0xf0]  ;;  %v3468_v35 = vor.u32 %v3869_v25, %v3467_v54  ;;  %v3536_v19 = vor.u32 %v3883_v13, %v3533_v14  ;;  %v3839_v25 = vld [vmem:[%s5483_s13 + $0x22c] sm:$0xf]  ;;  %v3908_v10 = vld [vmem:[%s5485_s15 + $0x50] sm:$0xff] }
 0x2e2   : > { %2292 = vmatmul.bf16.vlgmr.msra.gmra.mxu1 %v4958_v44  ;;  %2327 = vmatpush.bf16.msrb.mxu0 %v3260_v28  ;;  %v3581_v28 = vld [vmem:[%s5483_s13 + $0x3f8] sm:$0xf0]  ;;  %v3867_v56 = vld [vmem:[%s5483_s13 + $0x30c] sm:$0xf]  ;;  %v3920_v11 = vld [vmem:[%s5485_s15 + $0xb0] sm:$0xff] }
 0x2e3   : > { %2340 = vmatpush.bf16.msrb.mxu1 %v3388_v32  ;;  %v3823_v32 = vld [vmem:[%s5483_s13 + $0x1ac] sm:$0xf]  ;;  %v3245_v46 = vld [vmem:[%s5483_s13 + $0x158] sm:$0xf0] }
 0x2e4   : > { %2313 = vmatpush.bf16.msra.mxu3 %v3148_v37  ;;  %v3200_v37 = vor.u32 %v3799_v26, %v3197_v27  ;;  %v3517_v5 = vld [vmem:[%s5483_s13 + $0x378] sm:$0xf0]  ;;  %v3907_v14 = vld [vmem:[%s5485_s15 + $0x48] sm:$0xff] }
 0x2e5   : > { %2352 = vmatpush.bf16.msrb.mxu2 %v3532_v41  ;;  %v3584_v41 = vor.u32 %v3895_v58, %v3581_v28  ;;  %v3229_v38 = vld [vmem:[%s5483_s13 + $0x138] sm:$0xf0]  ;;  %v3520_v27 = vor.u32 %v3879_v50, %v3517_v5  ;;  %v3916_v5 = vld [vmem:[%s5485_s15 + $0x90] sm:$0xff] }
 0x2e6   : > { %2328 = vmatpush.bf16.msrb.mxu0 %v3244_v47  ;;  %v3296_v47 = vor.u32 %v3823_v32, %v3293_v33  ;;  %v3357_v26 = vld [vmem:[%s5483_s13 + $0x238] sm:$0xf0]  ;;  %v3232_v28 = vor.u32 %v3807_v23, %v3229_v38  ;;  %v3803_v33 = vld [vmem:[%s5483_s13 + $0x10c] sm:$0xf] }
 0x2e7   : > { %2341 = vmatpush.bf16.msrb.mxu1 %v3372_v51  ;;  %2266 = vmatmul.bf16.vlgmr.msrb.gmra.mxu3 %v4992_v4  ;;  %v3424_v51 = vor.u32 %v3855_v39, %v3421_v40  ;;  %v3117_v58 = vld [vmem:[%s5483_s13 + $0x58] sm:$0xf0]  ;;  %v3360_v32 = vor.u32 %v3839_v25, %v3357_v26  ;;  %v3835_v39 = vld [vmem:[%s5483_s13 + $0x20c] sm:$0xf] }
 0x2e8   : > { %2305 = vmatmul.bf16.vlgmr.msra.gmra.mxu2 %v5000_v9  ;;  %2314 = vmatpush.bf16.msra.mxu3 %v3132_v53  ;;  %v3184_v53 = vor.u32 %v3795_v43, %v3181_v45  ;;  %v3341_v40 = vld [vmem:[%s5483_s13 + $0x218] sm:$0xf0]  ;;  %v3775_v43 = vld [vmem:[%s5483_s13 + $0x2c] sm:$0xf] }
 0x2e9   : > { %2353 = vmatpush.bf16.msrb.mxu2 %v3516_v57  ;;  %v3568_v57 = vor.u32 %v3891_v48, %v3565_v49  ;;  %v3101_v45 = vld [vmem:[%s5483_s13 + $0x38] sm:$0xf0]  ;;  %v3871_v48 = vld [vmem:[%s5483_s13 + $0x32c] sm:$0xf] }
 0x2ea   : > { %2329 = vmatpush.bf16.msrb.mxu0 %v3228_v60  ;;  %v3280_v60 = vor.u32 %v3819_v52, %v3277_v1  ;;  %v3485_v49 = vld [vmem:[%s5483_s13 + $0x338] sm:$0xf0]  ;;  %v3104_v52 = vor.u32 %v3775_v43, %v3101_v45  ;;  %v3915_v25 = vld [vmem:[%s5485_s15 + $0x88] sm:$0xff] }
 0x2eb   : > { %2342 = vmatpush.bf16.msrb.mxu1 %v3356_v0  ;;  %v3815_v0 = vld [vmem:[%s5483_s13 + $0x16c] sm:$0xf]  ;;  %v3488_v1 = vor.u32 %v3871_v48, %v3485_v49  ;;  %v3085_v55 = vld [vmem:[%s5483_s13 + $0x18] sm:$0xf0]  ;;  %v3926_v48 = vld [vmem:[%s5485_s15 + $0xe0] sm:$0xff] }
 0x2ec   : > { %2315 = vmatpush.bf16.msra.mxu3 %v3116_v7  ;;  %v3389_v7 = vld [vmem:[%s5483_s13 + $0x278] sm:$0xf0]  ;;  %v3927_v43 = vld [vmem:[%s5485_s15 + $0xe8] sm:$0xff] }
 0x2ed   : > { %2354 = vmatpush.bf16.msrb.mxu2 %v3500_v12  ;;  %v3264_v12 = vor.u32 %v3815_v0, %v3261_v2  ;;  %v3392_v15 = vor.u32 %v3847_v6, %v3389_v7  ;;  %v3901_v62 = vld [vmem:[%s5485_s15 + $0x18] sm:$0xff]  ;;  %v3899_v0 = vld [vmem:[%s5485_s15 + $0x8] sm:$0xff]  ;;  %v3910_v6 = vld [vmem:[%s5485_s15 + $0x60] sm:$0xff] }
 0x2ee   : > { %2330 = vmatpush.bf16.msrb.mxu0 %v3212_v29  ;;  %v3811_v29 = vld [vmem:[%s5483_s13 + $0x14c] sm:$0xf]  ;;  %v3909_v7 = vld [vmem:[%s5485_s15 + $0x58] sm:$0xff] }
 0x2ef   : > { %2343 = vmatpush.bf16.msrb.mxu1 %v3340_v17  ;;  %v3843_v17 = vld [vmem:[%s5483_s13 + $0x24c] sm:$0xf]  ;;  %v3248_v34 = vor.u32 %v3811_v29, %v3245_v46  ;;  %v5403_v29 = vld [vmem:[%s5503_s24] sm:$0xf] }
 0x2f0   : > { %2316 = vmatpush.bf16.msra.mxu3 %v3100_v21  ;;  %v3133_v21 = vld [vmem:[%s5483_s13 + $0x78] sm:$0xf0]  ;;  %v3911_v2 = vld [vmem:[%s5485_s15 + $0x68] sm:$0xff]  ;;  %v3906_v46 = vld [vmem:[%s5485_s15 + $0x40] sm:$0xff] }
 0x2f1   : > { %2355 = vmatpush.bf16.msrb.mxu2 %v3484_v22  ;;  %2331 = vmatmul.bf16.vlgmr.msrb.gmra.mxu0 %v4950_v36 }
 0x2f2   : > { %2375 = vmatpush.bf16.msra.mxu0 %v3328_v18  ;;  %2344 = vmatmul.bf16.vlgmr.msrb.gmra.mxu1 %v4958_v44  ;;  %v3373_v18 = vld [vmem:[%s5483_s13 + $0x258] sm:$0xf0] }
 0x2f3   : > { %2388 = vmatpush.bf16.msra.mxu1 %v3456_v20  ;;  %v3783_v20 = vld [vmem:[%s5483_s13 + $0x6c] sm:$0xf]  ;;  %v3376_v22 = vor.u32 %v3843_v17, %v3373_v18 }
 0x2f4   : > { %2317 = vmatpush.bf16.msra.mxu3 %v3084_v31  ;;  %v3136_v54 = vor.u32 %v3783_v20, %v3133_v21  ;;  %v3501_v31 = vld [vmem:[%s5483_s13 + $0x358] sm:$0xf0] }
 0x2f5   : > { %2356 = vmatpush.bf16.msrb.mxu2 %v3468_v35  ;;  %v3213_v35 = vld [vmem:[%s5483_s13 + $0x118] sm:$0xf0] }
 0x2f6   : > { %2376 = vmatpush.bf16.msra.mxu0 %v3312_v42  ;;  %v3779_v42 = vld [vmem:[%s5483_s13 + $0x4c] sm:$0xf]  ;;  %v3917_v20 = vld [vmem:[%s5485_s15 + $0x98] sm:$0xff] }
 0x2f7   : > { %2389 = vmatpush.bf16.msra.mxu1 %v3440_v30  ;;  %2318 = vmatmul.bf16.vlgmr.msra.gmra.mxu3 %v4992_v4  ;;  %v3875_v30 = vld [vmem:[%s5483_s13 + $0x34c] sm:$0xf] }
 0x2f8   : > { %2362 = vmatpush.bf16.msrb.mxu3 %v3200_v37  ;;  %2357 = vmatmul.bf16.vlgmr.msrb.gmra.mxu2 %v5000_v9  ;;  %v3120_v37 = vor.u32 %v3779_v42, %v3117_v58 }
 0x2f9   : > { %2401 = vmatpush.bf16.msra.mxu2 %v3584_v41  ;;  %v3504_v41 = vor.u32 %v3875_v30, %v3501_v31  ;;  %v3929_v30 = vld [vmem:[%s5485_s15 + $0xf8] sm:$0xff] }
 0x2fa   : > { %2377 = vmatpush.bf16.msra.mxu0 %v3296_v47  ;;  %v3216_v47 = vor.u32 %v3803_v33, %v3213_v35  ;;  %v1559_v35 = vperm.slane %v5403_v29, 1 }
 0x2fb   : > { %2390 = vmatpush.bf16.msra.mxu1 %v3424_v51  ;;  %v3344_v51 = vor.u32 %v3835_v39, %v3341_v40 }
 0x2fc   : > { %2363 = vmatpush.bf16.msrb.mxu3 %v3184_v53  ;;  %v3771_v53 = vld [vmem:[%s5483_s13 + $0xc] sm:$0xf] }
 0x2fd   : > { %2402 = vmatpush.bf16.msra.mxu2 %v3568_v57  ;;  %v3469_v57 = vld [vmem:[%s5483_s13 + $0x318] sm:$0xf0]  ;;  %v3088_v24 = vor.u32 %v3771_v53, %v3085_v55 }
 0x2fe   : > { %2378 = vmatpush.bf16.msra.mxu0 %v3280_v60  ;;  %v3472_v59 = vor.u32 %v3867_v56, %v3469_v57  ;;  %v3905_v60 = vld [vmem:[%s5485_s15 + $0x38] sm:$0xff] }
 0x2ff   : > { %2391 = vmatpush.bf16.msra.mxu1 %v3408_v63  ;;  %v3912_v63 = vld [vmem:[%s5485_s15 + $0x70] sm:$0xff]  ;;  %v3925_v56 = vld [vmem:[%s5485_s15 + $0xd8] sm:$0xff] }
 0x300   : > { %2364 = vmatpush.bf16.msrb.mxu3 %v3168_v3  ;;  %v3898_v3 = vld [vmem:[%s5485_s15] sm:$0xff] }
 0x301   : > { %2403 = vmatpush.bf16.msra.mxu2 %v3552_v8  ;;  %v3921_v8 = vld [vmem:[%s5485_s15 + $0xb8] sm:$0xff] }
 0x302   : > { %2379 = vmatpush.bf16.msra.mxu0 %v3264_v12 }
 0x303   : > { %2392 = vmatpush.bf16.msra.mxu1 %v3392_v15  ;;  %v3919_v15 = vld [vmem:[%s5485_s15 + $0xa8] sm:$0xff] }
 0x304   : > { %2365 = vmatpush.bf16.msrb.mxu3 %v3152_v16  ;;  %v3918_v16 = vld [vmem:[%s5485_s15 + $0xa0] sm:$0xff] }
 0x305   : > { %2404 = vmatpush.bf16.msra.mxu2 %v3536_v19  ;;  %v1558_v19 = vperm.slane %v5403_v29, 0 }
 0x306   : > { %2380 = vmatpush.bf16.msra.mxu0 %v3248_v34 }
 0x307   : > { %2393 = vmatpush.bf16.msra.mxu1 %v3376_v22 }
 0x308   : > { %2366 = vmatpush.bf16.msrb.mxu3 %v3136_v54 }
 0x309   : > { %2405 = vmatpush.bf16.msra.mxu2 %v3520_v27 }
 0x30a   : > { %2381 = vmatpush.bf16.msra.mxu0 %v3232_v28  ;;  %v3914_v28 = vld [vmem:[%s5485_s15 + $0x80] sm:$0xff] }
 0x30b   : > { %2394 = vmatpush.bf16.msra.mxu1 %v3360_v32 }
 0x30c   : > { %2367 = vmatpush.bf16.msrb.mxu3 %v3120_v37  ;;  %v3928_v37 = vld [vmem:[%s5485_s15 + $0xf0] sm:$0xff] }
 0x30d   : > { %2406 = vmatpush.bf16.msra.mxu2 %v3504_v41 }
 0x30e   : > { %2382 = vmatpush.bf16.msra.mxu0 %v3216_v47 }
 0x30f   : > { %2395 = vmatpush.bf16.msra.mxu1 %v3344_v51 }
 0x310   : > { %2368 = vmatpush.bf16.msrb.mxu3 %v3104_v52 }
 0x311   : > { %2407 = vmatpush.bf16.msra.mxu2 %v3488_v1  ;;  %2383 = vmatmul.bf16.vlgmr.msra.gmra.mxu0 %v4950_v36  ;;  %v3903_v36 = vld [vmem:[%s5485_s15 + $0x28] sm:$0xff] }
 0x312   : > { %2396 = vmatmul.bf16.vlgmr.msra.gmra.mxu1 %v4958_v44  ;;  %v3902_v44 = vld [vmem:[%s5485_s15 + $0x20] sm:$0xff] }
 0x313   : > { %2708 = vmatpush.bf16.msrb.mxu1 %v3921_v8 }
 0x314   : > { %2369 = vmatpush.bf16.msrb.mxu3 %v3088_v24 }
 0x315   : > { %2408 = vmatpush.bf16.msra.mxu2 %v3472_v59 }
 0x317   : > { %2370 = vmatmul.bf16.vlgmr.msrb.gmra.mxu3 %v4992_v4  ;;  %v3913_v4 = vld [vmem:[%s5485_s15 + $0x78] sm:$0xff]  ;;  %2709 = vmatpush.bf16.msrb.mxu1 %v3920_v11 }
 0x318   : > { %2682 = vmatpush.bf16.msra.mxu3 %v3905_v60  ;;  %2409 = vmatmul.bf16.vlgmr.msra.gmra.mxu2 %v5000_v9  ;;  %v3900_v9 = vld [vmem:[%s5485_s15 + $0x10] sm:$0xff]  ;;  %v1560_v60 = vperm.slane %v5403_v29, 2 }
 0x319   : > { %2695 = vmatpush.bf16.msrb.mxu0 %v3913_v4  ;;  %2721 = vmatpush.bf16.msrb.mxu2 %v3929_v30  ;;  %v3923_v4 = vld [vmem:[%s5485_s15 + $0xc8] sm:$0xff] }
 0x31b   : > { %2710 = vmatpush.bf16.msrb.mxu1 %v3919_v15 }
 0x31c   : > { %2683 = vmatpush.bf16.msra.mxu3 %v3904_v61  ;;  %v3924_v61 = vld [vmem:[%s5485_s15 + $0xd0] sm:$0xff] }
 0x31d   : > { %2696 = vmatpush.bf16.msrb.mxu0 %v3912_v63  ;;  %2722 = vmatpush.bf16.msrb.mxu2 %v3928_v37 }
 0x31f   : > { %2711 = vmatpush.bf16.msrb.mxu1 %v3918_v16 }
 0x320   : > { %2684 = vmatpush.bf16.msra.mxu3 %v3903_v36 }
 0x321   : > { %2697 = vmatpush.bf16.msrb.mxu0 %v3911_v2  ;;  %2723 = vmatpush.bf16.msrb.mxu2 %v3927_v43 }
 0x323   : > { %2712 = vmatpush.bf16.msrb.mxu1 %v3917_v20 }
 0x324   : > { %2685 = vmatpush.bf16.msra.mxu3 %v3902_v44 }
 0x325   : > { %2698 = vmatpush.bf16.msrb.mxu0 %v3910_v6  ;;  %2724 = vmatpush.bf16.msrb.mxu2 %v3926_v48 }
 0x327   : > { %2713 = vmatpush.bf16.msrb.mxu1 %v3916_v5 }
 0x328   : > { %2686 = vmatpush.bf16.msra.mxu3 %v3901_v62 }
 0x329   : > { %2699 = vmatpush.bf16.msrb.mxu0 %v3909_v7  ;;  %2725 = vmatpush.bf16.msrb.mxu2 %v3925_v56 }
 0x32b   : > { %2714 = vmatpush.bf16.msrb.mxu1 %v3915_v25 }
 0x32c   : > { %2687 = vmatpush.bf16.msra.mxu3 %v3900_v9 }
 0x32d   : > { %2700 = vmatpush.bf16.msrb.mxu0 %v3908_v10  ;;  %2726 = vmatpush.bf16.msrb.mxu2 %v3924_v61 }
 0x32f   : > { %2715 = vmatpush.bf16.msrb.mxu1 %v3914_v28 }
 0x330   : > { %2688 = vmatpush.bf16.msra.mxu3 %v3899_v0  ;;  %v3922_v0 = vld [vmem:[%s5485_s15 + $0xc0] sm:$0xff] }
 0x331   : > { %2701 = vmatpush.bf16.msrb.mxu0 %v3907_v14  ;;  %2727 = vmatpush.bf16.msrb.mxu2 %v3923_v4  ;;  %v1561_v14 = vperm.slane %v5403_v29, 3  ;;  %v3982_v29 = vld [vmem:[%s5504_s0] ss:$0 sm:$0xff] }
 0x334   : > { %2689 = vmatpush.bf16.msra.mxu3 %v3898_v3 }
 0x335   : > { %2702 = vmatpush.bf16.msrb.mxu0 %v3906_v46  ;;  %2728 = vmatpush.bf16.msrb.mxu2 %v3922_v0 }
 0x34e   : > { %v2228_v12 = vpop.f32.mrf.mxu0 }
 0x34f   : > { %v2241_v13 = vpop.f32.mrf.mxu1 }
 0x356   : > { %v2230_v17 = vpop.f32.mrf.mxu0 }
 0x357   : > { %v2243_v18 = vpop.f32.mrf.mxu1 }
 0x35a   : > { %v2215_v21 = vpop.f32.mrf.mxu3 }
 0x35b   : > { %v2216_v34 = vadd.f32 %v2215_v21, %v1558_v19  ;;  %v2254_v50 = vpop.f32.mrf.mxu2 }
 0x35d   : > { %v2229_v22 = vadd.f32 %v2228_v12, %v2216_v34 }
 0x35e   : > { %v2280_v23 = vpop.f32.mrf.mxu0 }
 0x35f   : > { %v2242_v38 = vadd.f32 %v2241_v13, %v2229_v22  ;;  %v2293_v54 = vpop.f32.mrf.mxu1 }
 0x361   : > { %v2255_v26 = vadd.f32 %v2254_v50, %v2242_v38 }
 0x362   : > { %v2217_v27 = vpop.f32.mrf.mxu3 }
 0x363   : > { %v2414_v42 = vmax.f32 %v2255_v26, 0.0  ;;  %v2256_v58 = vpop.f32.mrf.mxu2 }
 0x365   : > { %v2418_v31 = vpack.c.bf16 %v2414_v42, %v2414_v42 }
 0x366   : > { %v2282_v32 = vpop.f32.mrf.mxu0 }
 0x367   : > { %v2295_v33 = vpop.f32.mrf.mxu1  ;;  %2690 = vmatmul.bf16.vlgmr.msra.gmra.mxu3 %v2418_v31 }
 0x36a   : > { %v2267_v39 = vpop.f32.mrf.mxu3 }
 0x36b   : > { %v2268_v40 = vadd.f32 %v2267_v39, %v1559_v35  ;;  %v2306_v41 = vpop.f32.mrf.mxu2 }
 0x36d   : > { %v2281_v45 = vadd.f32 %v2280_v23, %v2268_v40 }
 0x36e   : > { %v2332_v47 = vpop.f32.mrf.mxu0 }
 0x36f   : > { %v2294_v49 = vadd.f32 %v2293_v54, %v2281_v45  ;;  %v2345_v51 = vpop.f32.mrf.mxu1 }
 0x371   : > { %v2307_v52 = vadd.f32 %v2306_v41, %v2294_v49 }
 0x372   : > { %v2269_v1 = vpop.f32.mrf.mxu3 }
 0x373   : > { %v2415_v53 = vmax.f32 %v2307_v52, 0.0  ;;  %v2308_v55 = vpop.f32.mrf.mxu2 }
 0x375   : > { %v2419_v57 = vpack.c.bf16 %v2415_v53, %v2415_v53 }
 0x376   : > { %v2334_v24 = vpop.f32.mrf.mxu0 }
 0x377   : > { %v2347_v59 = vpop.f32.mrf.mxu1  ;;  %2703 = vmatmul.bf16.vlgmr.msrb.gmra.mxu0 %v2419_v57 }
 0x37a   : > { %v2319_v36 = vpop.f32.mrf.mxu3 }
 0x37b   : > { %v2320_v44 = vadd.f32 %v2319_v36, %v1560_v60  ;;  %v2358_v62 = vpop.f32.mrf.mxu2 }
 0x37d   : > { %v2333_v9 = vadd.f32 %v2332_v47, %v2320_v44 }
 0x37f   : > { %v2346_v63 = vadd.f32 %v2345_v51, %v2333_v9 }
 0x381   : > { %v2359_v2 = vadd.f32 %v2358_v62, %v2346_v63 }
 0x382   : > { %v2321_v3 = vpop.f32.mrf.mxu3 }
 0x383   : > { %v2416_v6 = vmax.f32 %v2359_v2, 0.0  ;;  %v2360_v7 = vpop.f32.mrf.mxu2 }
 0x385   : > { %v2420_v8 = vpack.c.bf16 %v2416_v6, %v2416_v6 }
 0x387   : > { %2716 = vmatmul.bf16.vlgmr.msrb.gmra.mxu1 %v2420_v8 }
 0x38e   : > { %v2384_v10 = vpop.f32.mrf.mxu0 }
 0x38f   : > { %v2397_v11 = vpop.f32.mrf.mxu1 }
 0x396   : > { %v2386_v12 = vpop.f32.mrf.mxu0 }
 0x397   : > { %v2399_v13 = vpop.f32.mrf.mxu1 }
 0x39a   : > { %v2371_v15 = vpop.f32.mrf.mxu3 }
 0x39b   : > { %v2372_v46 = vadd.f32 %v2371_v15, %v1561_v14  ;;  %v2410_v16 = vpop.f32.mrf.mxu2 }
 0x39d   : > { %v2385_v17 = vadd.f32 %v2384_v10, %v2372_v46 }
 0x39f   : > { %v2398_v18 = vadd.f32 %v2397_v11, %v2385_v17 }
 0x3a1   : > { %v2411_v19 = vadd.f32 %v2410_v16, %v2398_v18 }
 0x3a2   : > { %v2373_v20 = vpop.f32.mrf.mxu3 }
 0x3a3   : > { %v2417_v21 = vmax.f32 %v2411_v19, 0.0  ;;  %v2412_v34 = vpop.f32.mrf.mxu2 }
 0x3a5   : > { %v2421_v50 = vpack.c.bf16 %v2417_v21, %v2417_v21 }
 0x3a7   : > { %2729 = vmatmul.bf16.vlgmr.msrb.gmra.mxu2 %v2421_v50 }
 0x3ea   : > { %v2691_v5 = vpop.f32.mrf.mxu3 }
 0x3eb   : > { %v2692_v26 = vadd.f32 %v3982_v29, %v2691_v5 }
 0x3f2   : > { %v2693_v22 = vpop.f32.mrf.mxu3 }
 0x3f4   : > { %v2704_v23 = vpop.f32.mrf.mxu0 }
 0x3f5   : > { %v2705_v27 = vadd.f32 %v2704_v23, %v2692_v26 }
 0x3fc   : > { %v2706_v38 = vpop.f32.mrf.mxu0 }
 0x404   : > { %v2717_v54 = vpop.f32.mrf.mxu1 }
 0x405   : > { %v2718_v42 = vadd.f32 %v2717_v54, %v2705_v27 }
 0x40c   : > { %v2719_v25 = vpop.f32.mrf.mxu1 }
 0x42a   : > { %v2730_v58 = vpop.f32.mrf.mxu2 }
 0x42b   : > { %v2731_v28 = vadd.f32 %v2730_v58, %v2718_v42 }
 0x42d   : > { %2734 = vst [vmem:[%s4156_s23] sm:$0xff] %v2731_v28 }
 0x432   : > { %v2732_v30 = vpop.f32.mrf.mxu2 }
 0x433 PF: > { %s5505_s19 = sld [smem:[#allocation5_spill]] }
 0x434   : > { %s5506_s24 = sld [smem:[#allocation3_spill]] }
 0x435   : > { %s5507_s25 = sld [smem:[#allocation4_spill]] }
 0x436   : > { %s5508_s26 = sld [smem:[#allocation6_spill]] }
 0x437   : > { %s5509_s27 = sld [smem:[#allocation7_spill]] }
 0x439   : > { %s27_s28 = sadd.s32 1, %s5505_s19  }
 0x43a   : > { %p24_p9 = scmp.ge.s32.totalorder %s27_s28, 6  }
 0x43c   :  { %26 = sbr.rel (!%p24_p9) target bundleno = 5 (0x5), region = 129 }

</bundles_post_ra>
